<compile_context>
chip_gen: v7x
topology: tpu7x:2x2x1
jax: 0.10.0
libtpu: 0.0.40
codegen_flags: <defaults>
</compile_context>

<pallas_src>
import math

import jax
import jax.numpy as jnp
from jax.experimental import pallas as pl
from jax.experimental.pallas import tpu as pltpu


# ----------------------------------------------------------------- kernel ---

def _make_pnet_kernel(h, w):
    """Fused PNet kernel for one (3, h*w) image block (spatial flattened in lanes)."""
    m = h * w

    def fill_slab(slab_ref, act, cin, step):
        # slab[(kh*3+kw)*cin + c, q] = act[c, q + step*(kh*w + kw)]
        # Columns left at zero only feed *invalid* (border / non-stride-2)
        # output positions, which glue discards, so no masking is needed.
        slab_ref[...] = jnp.zeros_like(slab_ref)
        m_act = act.shape[1]
        for kh in range(3):
            for kw in range(3):
                k = kh * 3 + kw
                d = step * (kh * w + kw)
                rows = slice(k * cin, (k + 1) * cin)
                if d == 0:
                    slab_ref[rows, 0:m_act] = act
                else:
                    slab_ref[rows, 0:m_act - d] = act[:, d:]

    def conv_prelu(slab_ref, w_ref, b_ref, alpha):
        y = jnp.dot(w_ref[...], slab_ref[...],
                    preferred_element_type=jnp.float32) + b_ref[...]
        return jnp.where(y >= 0.0, y, alpha * y)

    def kernel(alpha_ref,                        # (3, 1)  PReLU alphas
               x_ref,                            # (1, 3, m) one image
               w1_ref, b1_ref,                   # (10, 27), (10, 1)
               w2_ref, b2_ref,                   # (16, 90), (16, 1)
               w3_ref, b3_ref,                   # (32, 144), (32, 1)
               wh_ref, bh_ref,                   # (5, 32), (5, 1) merged heads
               out_ref,                          # (1, 5, m)
               slab1_ref, slab2_ref, slab3_ref):  # im2col VMEM scratch slabs
        x = x_ref[0]                                                  # (3, m)

        # conv1 (3x3) + PReLU : one wide-K matmul (10, 27) @ (27, m)
        fill_slab(slab1_ref, x, 3, 1)
        y1 = conv_prelu(slab1_ref, w1_ref, b1_ref, alpha_ref[0:1, :])  # (10, m)

        # 2x2 / stride-2 maxpool (floor mode, as in nn.MaxPool2d(2, 2)),
        # kept in place on the stride-2 positions of the original grid:
        # pooled[:, q] = max(y1[:, q], y1[:, q+1], y1[:, q+w], y1[:, q+w+1])
        mw = m - w - 1
        pooled = jnp.maximum(
            jnp.maximum(y1[:, 0:mw], y1[:, 1:mw + 1]),
            jnp.maximum(y1[:, w:w + mw], y1[:, w + 1:w + 1 + mw]))     # (10, mw)

        # conv2 (3x3) + PReLU on the stride-2 grid : (16, 90) @ (90, m)
        fill_slab(slab2_ref, pooled, 10, 2)
        y2 = conv_prelu(slab2_ref, w2_ref, b2_ref, alpha_ref[1:2, :])  # (16, m)

        # conv3 (3x3) + PReLU : (32, 144) @ (144, m)
        fill_slab(slab3_ref, y2, 16, 2)
        y3 = conv_prelu(slab3_ref, w3_ref, b3_ref, alpha_ref[2:3, :])  # (32, m)

        # merged 1x1 heads; sigmoid only on the label row
        logits = jnp.dot(wh_ref[...], y3,
                         preferred_element_type=jnp.float32) + bh_ref[...]
        out_ref[0] = logits
        out_ref[0, 0:1, :] = jax.nn.sigmoid(logits[0:1, :])

    return kernel


# ------------------------------------------------------------- parameters ---

def init_params(key):
    """Synthetic PyTorch-style weights + kernel-ready flattened layouts."""
    ks = jax.random.split(key, 10)

    def conv_w(k, cout, cin, kh, kw):
        n = kh * kw * cout
        return jax.random.normal(k, (cout, cin, kh, kw), jnp.float32) * math.sqrt(2.0 / n)

    raw = {
        "w1": conv_w(ks[0], 10, 3, 3, 3),
        "b1": 0.01 * jax.random.normal(ks[1], (10,), jnp.float32),
        "w2": conv_w(ks[2], 16, 10, 3, 3),
        "b2": 0.01 * jax.random.normal(ks[3], (16,), jnp.float32),
        "w3": conv_w(ks[4], 32, 16, 3, 3),
        "b3": 0.01 * jax.random.normal(ks[5], (32,), jnp.float32),
        "w41": conv_w(ks[6], 1, 32, 1, 1),
        "b41": 0.01 * jax.random.normal(ks[7], (1,), jnp.float32),
        "w42": conv_w(ks[8], 4, 32, 1, 1),
        "b42": 0.01 * jax.random.normal(ks[9], (4,), jnp.float32),
        "a1": jnp.float32(0.25), "a2": jnp.float32(0.25), "a3": jnp.float32(0.25),
    }

    def flat_k(wgt):   # (Cout, Cin, 3, 3) -> (Cout, 9*Cin), K ordered (kh, kw, cin)
        cout, cin = wgt.shape[0], wgt.shape[1]
        return wgt.transpose(0, 2, 3, 1).reshape(cout, 9 * cin)

    params = {
        "alpha": jnp.full((3, 1), 0.25, jnp.float32),
        "w1": flat_k(raw["w1"]), "b1": raw["b1"].reshape(10, 1),
        "w2": flat_k(raw["w2"]), "b2": raw["b2"].reshape(16, 1),
        "w3": flat_k(raw["w3"]), "b3": raw["b3"].reshape(32, 1),
        # merged heads: row 0 = conv4_1 (label), rows 1..4 = conv4_2 (offsets)
        "wh": jnp.concatenate([raw["w41"].reshape(1, 32),
                               raw["w42"].reshape(4, 32)], axis=0),
        "bh": jnp.concatenate([raw["b41"], raw["b42"]]).reshape(5, 1),
    }
    return params, raw


# ----------------------------------------------------------------- forward --

@jax.jit
def pnet_forward(x_nchw, params):
    x = x_nchw.astype(jnp.float32)
    n, c, h, w = x.shape
    assert c == 3 and h >= 12 and w >= 12
    hw = h * w
    h1, w1 = h - 2, w - 2          # after conv1
    hp, wp = h1 // 2, w1 // 2      # after pool
    h2, w2 = hp - 2, wp - 2        # after conv2
    h3, w3 = h2 - 2, w2 - 2        # after conv3 / heads

    kernel = _make_pnet_kernel(h, w)

    grid_spec = pltpu.PrefetchScalarGridSpec(
        num_scalar_prefetch=0,
        grid=(n,),                                          # per-image, halo-free
        in_specs=[
            pl.BlockSpec((3, 1), lambda i: (0, 0)),         # PReLU alphas
            pl.BlockSpec((1, 3, hw), lambda i: (i, 0, 0)),  # image i (lane-dense)
            pl.BlockSpec((10, 27), lambda i: (0, 0)),
            pl.BlockSpec((10, 1), lambda i: (0, 0)),
            pl.BlockSpec((16, 90), lambda i: (0, 0)),
            pl.BlockSpec((16, 1), lambda i: (0, 0)),
            pl.BlockSpec((32, 144), lambda i: (0, 0)),
            pl.BlockSpec((32, 1), lambda i: (0, 0)),
            pl.BlockSpec((5, 32), lambda i: (0, 0)),
            pl.BlockSpec((5, 1), lambda i: (0, 0)),
        ],
        out_specs=pl.BlockSpec((1, 5, hw), lambda i: (i, 0, 0)),
        scratch_shapes=[
            pltpu.VMEM((27, hw), jnp.float32),    # conv1 im2col slab
            pltpu.VMEM((90, hw), jnp.float32),    # conv2 im2col slab
            pltpu.VMEM((144, hw), jnp.float32),   # conv3 im2col slab
        ],
    )

    out = pl.pallas_call(
        kernel,
        grid_spec=grid_spec,
        out_shape=jax.ShapeDtypeStruct((n, 5, hw), jnp.float32),
        compiler_params=pltpu.CompilerParams(
            dimension_semantics=("parallel",)),
    )(params["alpha"], x.reshape(n, 3, hw),
      params["w1"], params["b1"], params["w2"], params["b2"],
      params["w3"], params["b3"], params["wh"], params["bh"])

    # Valid results sit at the stride-2 in-place positions of the original grid.
    out4 = out.reshape(n, 5, h, w)
    valid = out4[:, :, 0:2 * h3:2, 0:2 * w3:2]        # (N, 5, h3, w3)
    label = valid[:, 0:1]                             # sigmoid already applied
    offset = valid[:, 1:5]
    return label, offset


# ------------------------------------------------------- pure-JAX reference -

def pnet_reference(x, raw):
    def conv(hx, wgt, b):
        y = jax.lax.conv_general_dilated(hx, wgt, (1, 1), "VALID",
                                         dimension_numbers=("NCHW", "OIHW", "NCHW"))
        return y + b.reshape(1, -1, 1, 1)

    def prelu(hx, a):
        return jnp.where(hx >= 0.0, hx, a * hx)

    hx = prelu(conv(x, raw["w1"], raw["b1"]), raw["a1"])
    hx = jax.lax.reduce_window(hx, -jnp.inf, jax.lax.max,
                               (1, 1, 2, 2), (1, 1, 2, 2), "VALID")
    hx = prelu(conv(hx, raw["w2"], raw["b2"]), raw["a2"])
    hx = prelu(conv(hx, raw["w3"], raw["b3"]), raw["a3"])
    label = jax.nn.sigmoid(conv(hx, raw["w41"], raw["b41"]))
    offset = conv(hx, raw["w42"], raw["b42"])
    return label, offset


if __name__ == "__main__":
    key = jax.random.PRNGKey(0)
    pkey, xkey = jax.random.split(key)
    params, raw = init_params(pkey)

    N, C, H, W = 2, 3, 16, 16
    x = jax.random.normal(xkey, (N, C, H, W), jnp.float32)      # NCHW, like PyTorch

    label, offset = pnet_forward(x, params)
    jax.block_until_ready((label, offset))

    assert label.shape == (N, 1, 3, 3), label.shape
    assert offset.shape == (N, 4, 3, 3), offset.shape
    assert bool(jnp.all((label >= 0.0) & (label <= 1.0)))

    ref_label, ref_offset = pnet_reference(x, raw)
    assert bool(jnp.allclose(label, ref_label, rtol=1e-2, atol=1e-2)), \
        float(jnp.max(jnp.abs(label - ref_label)))
    assert bool(jnp.allclose(offset, ref_offset, rtol=1e-2, atol=1e-2)), \
        float(jnp.max(jnp.abs(offset - ref_offset)))

    print("KERNEL_OK")
</pallas_src>

<mosaic_0001>
module attributes {stable_mosaic.version = 11 : i64} {
  func.func @kernel(%arg0: i32, %arg1: memref<3x1xf32, #tpu.memory_space<vmem>>, %arg2: memref<1x3x256xf32, #tpu.memory_space<vmem>>, %arg3: memref<10x27xf32, #tpu.memory_space<vmem>>, %arg4: memref<10x1xf32, #tpu.memory_space<vmem>>, %arg5: memref<16x90xf32, #tpu.memory_space<vmem>>, %arg6: memref<16x1xf32, #tpu.memory_space<vmem>>, %arg7: memref<32x144xf32, #tpu.memory_space<vmem>>, %arg8: memref<32x1xf32, #tpu.memory_space<vmem>>, %arg9: memref<5x32xf32, #tpu.memory_space<vmem>>, %arg10: memref<5x1xf32, #tpu.memory_space<vmem>>, %arg11: memref<1x5x256xf32, #tpu.memory_space<vmem>>, %arg12: memref<27x256xf32, #tpu.memory_space<vmem>>, %arg13: memref<90x256xf32, #tpu.memory_space<vmem>>, %arg14: memref<144x256xf32, #tpu.memory_space<vmem>>) attributes {dimension_semantics = [#tpu.dimension_semantics<parallel>], iteration_bounds = array<i64: 2>, scalar_prefetch = 0 : i64, scratch_operands = 3 : i64, tpu.core_type = #tpu.core_type<tc>, window_params = [{pipeline_mode = #tpu.pipeline_mode<synchronous>, transform_indices = @transform_0, window_bounds = array<i64: 3, 1>}, {transform_indices = @transform_1, window_bounds = array<i64: 1, 3, 256>}, {pipeline_mode = #tpu.pipeline_mode<synchronous>, transform_indices = @transform_2, window_bounds = array<i64: 10, 27>}, {pipeline_mode = #tpu.pipeline_mode<synchronous>, transform_indices = @transform_3, window_bounds = array<i64: 10, 1>}, {pipeline_mode = #tpu.pipeline_mode<synchronous>, transform_indices = @transform_4, window_bounds = array<i64: 16, 90>}, {pipeline_mode = #tpu.pipeline_mode<synchronous>, transform_indices = @transform_5, window_bounds = array<i64: 16, 1>}, {pipeline_mode = #tpu.pipeline_mode<synchronous>, transform_indices = @transform_6, window_bounds = array<i64: 32, 144>}, {pipeline_mode = #tpu.pipeline_mode<synchronous>, transform_indices = @transform_7, window_bounds = array<i64: 32, 1>}, {pipeline_mode = #tpu.pipeline_mode<synchronous>, transform_indices = @transform_8, window_bounds = array<i64: 5, 32>}, {pipeline_mode = #tpu.pipeline_mode<synchronous>, transform_indices = @transform_9, window_bounds = array<i64: 5, 1>}, {transform_indices = @transform_10, window_bounds = array<i64: 1, 5, 256>}]} {
    %c0 = arith.constant 0 : index
    %c0_0 = arith.constant 0 : index
    %c0_1 = arith.constant 0 : index
    %0 = vector.load %arg2[%c0, %c0_0, %c0_1] : memref<1x3x256xf32, #tpu.memory_space<vmem>>, vector<1x3x256xf32>
    %1 = vector.shape_cast %0 : vector<1x3x256xf32> to vector<3x256xf32>
    %cst = arith.constant 0.000000e+00 : f32
    %2 = vector.broadcast %cst : f32 to vector<27x256xf32>
    %c0_2 = arith.constant 0 : index
    %c0_3 = arith.constant 0 : index
    %3 = vector.load %arg12[%c0_2, %c0_3] : memref<27x256xf32, #tpu.memory_space<vmem>>, vector<27x256xf32>
    tpu.vector_store %arg12[%c0_2, %c0_3], %2 {strides = array<i32>} : memref<27x256xf32, #tpu.memory_space<vmem>>, vector<27x256xf32>,
    %c0_4 = arith.constant 0 : index
    %c0_5 = arith.constant 0 : index
    %4 = vector.load %arg12[%c0_4, %c0_5] : memref<27x256xf32, #tpu.memory_space<vmem>>, vector<3x256xf32>
    tpu.vector_store %arg12[%c0_4, %c0_5], %1 {strides = array<i32>} : memref<27x256xf32, #tpu.memory_space<vmem>>, vector<3x256xf32>,
    %5 = vector.extract_strided_slice %1 {offsets = [0, 1], sizes = [3, 255], strides = [1, 1]} : vector<3x256xf32> to vector<3x255xf32>
    %c3 = arith.constant 3 : index
    %c0_6 = arith.constant 0 : index
    %6 = vector.load %arg12[%c3, %c0_6] : memref<27x256xf32, #tpu.memory_space<vmem>>, vector<3x255xf32>
    tpu.vector_store %arg12[%c3, %c0_6], %5 {strides = array<i32>} : memref<27x256xf32, #tpu.memory_space<vmem>>, vector<3x255xf32>,
    %7 = vector.extract_strided_slice %1 {offsets = [0, 2], sizes = [3, 254], strides = [1, 1]} : vector<3x256xf32> to vector<3x254xf32>
    %c6 = arith.constant 6 : index
    %c0_7 = arith.constant 0 : index
    %8 = vector.load %arg12[%c6, %c0_7] : memref<27x256xf32, #tpu.memory_space<vmem>>, vector<3x254xf32>
    tpu.vector_store %arg12[%c6, %c0_7], %7 {strides = array<i32>} : memref<27x256xf32, #tpu.memory_space<vmem>>, vector<3x254xf32>,
    %9 = vector.extract_strided_slice %1 {offsets = [0, 16], sizes = [3, 240], strides = [1, 1]} : vector<3x256xf32> to vector<3x240xf32>
    %c9 = arith.constant 9 : index
    %c0_8 = arith.constant 0 : index
    %10 = vector.load %arg12[%c9, %c0_8] : memref<27x256xf32, #tpu.memory_space<vmem>>, vector<3x240xf32>
    tpu.vector_store %arg12[%c9, %c0_8], %9 {strides = array<i32>} : memref<27x256xf32, #tpu.memory_space<vmem>>, vector<3x240xf32>,
    %11 = vector.extract_strided_slice %1 {offsets = [0, 17], sizes = [3, 239], strides = [1, 1]} : vector<3x256xf32> to vector<3x239xf32>
    %c12 = arith.constant 12 : index
    %c0_9 = arith.constant 0 : index
    %12 = vector.load %arg12[%c12, %c0_9] : memref<27x256xf32, #tpu.memory_space<vmem>>, vector<3x239xf32>
    tpu.vector_store %arg12[%c12, %c0_9], %11 {strides = array<i32>} : memref<27x256xf32, #tpu.memory_space<vmem>>, vector<3x239xf32>,
    %13 = vector.extract_strided_slice %1 {offsets = [0, 18], sizes = [3, 238], strides = [1, 1]} : vector<3x256xf32> to vector<3x238xf32>
    %c15 = arith.constant 15 : index
    %c0_10 = arith.constant 0 : index
    %14 = vector.load %arg12[%c15, %c0_10] : memref<27x256xf32, #tpu.memory_space<vmem>>, vector<3x238xf32>
    tpu.vector_store %arg12[%c15, %c0_10], %13 {strides = array<i32>} : memref<27x256xf32, #tpu.memory_space<vmem>>, vector<3x238xf32>,
    %15 = vector.extract_strided_slice %1 {offsets = [0, 32], sizes = [3, 224], strides = [1, 1]} : vector<3x256xf32> to vector<3x224xf32>
    %c18 = arith.constant 18 : index
    %c0_11 = arith.constant 0 : index
    %16 = vector.load %arg12[%c18, %c0_11] : memref<27x256xf32, #tpu.memory_space<vmem>>, vector<3x224xf32>
    tpu.vector_store %arg12[%c18, %c0_11], %15 {strides = array<i32>} : memref<27x256xf32, #tpu.memory_space<vmem>>, vector<3x224xf32>,
    %17 = vector.extract_strided_slice %1 {offsets = [0, 33], sizes = [3, 223], strides = [1, 1]} : vector<3x256xf32> to vector<3x223xf32>
    %c21 = arith.constant 21 : index
    %c0_12 = arith.constant 0 : index
    %18 = vector.load %arg12[%c21, %c0_12] : memref<27x256xf32, #tpu.memory_space<vmem>>, vector<3x223xf32>
    tpu.vector_store %arg12[%c21, %c0_12], %17 {strides = array<i32>} : memref<27x256xf32, #tpu.memory_space<vmem>>, vector<3x223xf32>,
    %19 = vector.extract_strided_slice %1 {offsets = [0, 34], sizes = [3, 222], strides = [1, 1]} : vector<3x256xf32> to vector<3x222xf32>
    %c24 = arith.constant 24 : index
    %c0_13 = arith.constant 0 : index
    %20 = vector.load %arg12[%c24, %c0_13] : memref<27x256xf32, #tpu.memory_space<vmem>>, vector<3x222xf32>
    tpu.vector_store %arg12[%c24, %c0_13], %19 {strides = array<i32>} : memref<27x256xf32, #tpu.memory_space<vmem>>, vector<3x222xf32>,
    %c0_14 = arith.constant 0 : index
    %c0_15 = arith.constant 0 : index
    %21 = vector.load %arg1[%c0_14, %c0_15] : memref<3x1xf32, #tpu.memory_space<vmem>>, vector<1x1xf32>
    %c0_16 = arith.constant 0 : index
    %c0_17 = arith.constant 0 : index
    %22 = vector.load %arg3[%c0_16, %c0_17] : memref<10x27xf32, #tpu.memory_space<vmem>>, vector<10x27xf32>
    %c0_18 = arith.constant 0 : index
    %c0_19 = arith.constant 0 : index
    %23 = vector.load %arg12[%c0_18, %c0_19] : memref<27x256xf32, #tpu.memory_space<vmem>>, vector<27x256xf32>
    %cst_20 = arith.constant dense<0.000000e+00> : vector<10x256xf32>
    %24 = tpu.matmul %22, %23, %cst_20 {dimension_numbers = #tpu.dot_dimension_numbers<[1], [0], [0], [1], [0, 0, 1, 1], [], []>} : vector<10x27xf32>, vector<27x256xf32>, vector<10x256xf32> -> vector<10x256xf32>
    %c0_21 = arith.constant 0 : index
    %c0_22 = arith.constant 0 : index
    %25 = vector.load %arg4[%c0_21, %c0_22] : memref<10x1xf32, #tpu.memory_space<vmem>>, vector<10x1xf32>
    %26 = vector.broadcast %25 : vector<10x1xf32> to vector<10x256xf32>
    %27 = arith.addf %24, %26 : vector<10x256xf32>
    %cst_23 = arith.constant 0.000000e+00 : f32
    %28 = vector.broadcast %cst_23 : f32 to vector<10x256xf32>
    %29 = arith.cmpf oge, %27, %28 : vector<10x256xf32>
    %30 = vector.broadcast %21 : vector<1x1xf32> to vector<10x256xf32>
    %31 = arith.mulf %30, %27 : vector<10x256xf32>
    %32 = arith.select %29, %27, %31 : vector<10x256xi1>, vector<10x256xf32>
    %33 = vector.extract_strided_slice %32 {offsets = [0, 0], sizes = [10, 239], strides = [1, 1]} : vector<10x256xf32> to vector<10x239xf32>
    %34 = vector.extract_strided_slice %32 {offsets = [0, 1], sizes = [10, 239], strides = [1, 1]} : vector<10x256xf32> to vector<10x239xf32>
    %35 = arith.maximumf %33, %34 : vector<10x239xf32>
    %36 = vector.extract_strided_slice %32 {offsets = [0, 16], sizes = [10, 239], strides = [1, 1]} : vector<10x256xf32> to vector<10x239xf32>
    %37 = vector.extract_strided_slice %32 {offsets = [0, 17], sizes = [10, 239], strides = [1, 1]} : vector<10x256xf32> to vector<10x239xf32>
    %38 = arith.maximumf %36, %37 : vector<10x239xf32>
    %39 = arith.maximumf %35, %38 : vector<10x239xf32>
    %cst_24 = arith.constant 0.000000e+00 : f32
    %40 = vector.broadcast %cst_24 : f32 to vector<90x256xf32>
    %c0_25 = arith.constant 0 : index
    %c0_26 = arith.constant 0 : index
    %41 = vector.load %arg13[%c0_25, %c0_26] : memref<90x256xf32, #tpu.memory_space<vmem>>, vector<90x256xf32>
    tpu.vector_store %arg13[%c0_25, %c0_26], %40 {strides = array<i32>} : memref<90x256xf32, #tpu.memory_space<vmem>>, vector<90x256xf32>,
    %c0_27 = arith.constant 0 : index
    %c0_28 = arith.constant 0 : index
    %42 = vector.load %arg13[%c0_27, %c0_28] : memref<90x256xf32, #tpu.memory_space<vmem>>, vector<10x239xf32>
    tpu.vector_store %arg13[%c0_27, %c0_28], %39 {strides = array<i32>} : memref<90x256xf32, #tpu.memory_space<vmem>>, vector<10x239xf32>,
    %43 = vector.extract_strided_slice %39 {offsets = [0, 2], sizes = [10, 237], strides = [1, 1]} : vector<10x239xf32> to vector<10x237xf32>
    %c10 = arith.constant 10 : index
    %c0_29 = arith.constant 0 : index
    %44 = vector.load %arg13[%c10, %c0_29] : memref<90x256xf32, #tpu.memory_space<vmem>>, vector<10x237xf32>
    tpu.vector_store %arg13[%c10, %c0_29], %43 {strides = array<i32>} : memref<90x256xf32, #tpu.memory_space<vmem>>, vector<10x237xf32>,
    %45 = vector.extract_strided_slice %39 {offsets = [0, 4], sizes = [10, 235], strides = [1, 1]} : vector<10x239xf32> to vector<10x235xf32>
    %c20 = arith.constant 20 : index
    %c0_30 = arith.constant 0 : index
    %46 = vector.load %arg13[%c20, %c0_30] : memref<90x256xf32, #tpu.memory_space<vmem>>, vector<10x235xf32>
    tpu.vector_store %arg13[%c20, %c0_30], %45 {strides = array<i32>} : memref<90x256xf32, #tpu.memory_space<vmem>>, vector<10x235xf32>,
    %47 = vector.extract_strided_slice %39 {offsets = [0, 32], sizes = [10, 207], strides = [1, 1]} : vector<10x239xf32> to vector<10x207xf32>
    %c30 = arith.constant 30 : index
    %c0_31 = arith.constant 0 : index
    %48 = vector.load %arg13[%c30, %c0_31] : memref<90x256xf32, #tpu.memory_space<vmem>>, vector<10x207xf32>
    tpu.vector_store %arg13[%c30, %c0_31], %47 {strides = array<i32>} : memref<90x256xf32, #tpu.memory_space<vmem>>, vector<10x207xf32>,
    %49 = vector.extract_strided_slice %39 {offsets = [0, 34], sizes = [10, 205], strides = [1, 1]} : vector<10x239xf32> to vector<10x205xf32>
    %c40 = arith.constant 40 : index
    %c0_32 = arith.constant 0 : index
    %50 = vector.load %arg13[%c40, %c0_32] : memref<90x256xf32, #tpu.memory_space<vmem>>, vector<10x205xf32>
    tpu.vector_store %arg13[%c40, %c0_32], %49 {strides = array<i32>} : memref<90x256xf32, #tpu.memory_space<vmem>>, vector<10x205xf32>,
    %51 = vector.extract_strided_slice %39 {offsets = [0, 36], sizes = [10, 203], strides = [1, 1]} : vector<10x239xf32> to vector<10x203xf32>
    %c50 = arith.constant 50 : index
    %c0_33 = arith.constant 0 : index
    %52 = vector.load %arg13[%c50, %c0_33] : memref<90x256xf32, #tpu.memory_space<vmem>>, vector<10x203xf32>
    tpu.vector_store %arg13[%c50, %c0_33], %51 {strides = array<i32>} : memref<90x256xf32, #tpu.memory_space<vmem>>, vector<10x203xf32>,
    %53 = vector.extract_strided_slice %39 {offsets = [0, 64], sizes = [10, 175], strides = [1, 1]} : vector<10x239xf32> to vector<10x175xf32>
    %c60 = arith.constant 60 : index
    %c0_34 = arith.constant 0 : index
    %54 = vector.load %arg13[%c60, %c0_34] : memref<90x256xf32, #tpu.memory_space<vmem>>, vector<10x175xf32>
    tpu.vector_store %arg13[%c60, %c0_34], %53 {strides = array<i32>} : memref<90x256xf32, #tpu.memory_space<vmem>>, vector<10x175xf32>,
    %55 = vector.extract_strided_slice %39 {offsets = [0, 66], sizes = [10, 173], strides = [1, 1]} : vector<10x239xf32> to vector<10x173xf32>
    %c70 = arith.constant 70 : index
    %c0_35 = arith.constant 0 : index
    %56 = vector.load %arg13[%c70, %c0_35] : memref<90x256xf32, #tpu.memory_space<vmem>>, vector<10x173xf32>
    tpu.vector_store %arg13[%c70, %c0_35], %55 {strides = array<i32>} : memref<90x256xf32, #tpu.memory_space<vmem>>, vector<10x173xf32>,
    %57 = vector.extract_strided_slice %39 {offsets = [0, 68], sizes = [10, 171], strides = [1, 1]} : vector<10x239xf32> to vector<10x171xf32>
    %c80 = arith.constant 80 : index
    %c0_36 = arith.constant 0 : index
    %58 = vector.load %arg13[%c80, %c0_36] : memref<90x256xf32, #tpu.memory_space<vmem>>, vector<10x171xf32>
    tpu.vector_store %arg13[%c80, %c0_36], %57 {strides = array<i32>} : memref<90x256xf32, #tpu.memory_space<vmem>>, vector<10x171xf32>,
    %c1 = arith.constant 1 : index
    %c0_37 = arith.constant 0 : index
    %59 = vector.load %arg1[%c1, %c0_37] : memref<3x1xf32, #tpu.memory_space<vmem>>, vector<1x1xf32>
    %c0_38 = arith.constant 0 : index
    %c0_39 = arith.constant 0 : index
    %60 = vector.load %arg5[%c0_38, %c0_39] : memref<16x90xf32, #tpu.memory_space<vmem>>, vector<16x90xf32>
    %c0_40 = arith.constant 0 : index
    %c0_41 = arith.constant 0 : index
    %61 = vector.load %arg13[%c0_40, %c0_41] : memref<90x256xf32, #tpu.memory_space<vmem>>, vector<90x256xf32>
    %cst_42 = arith.constant dense<0.000000e+00> : vector<16x256xf32>
    %62 = tpu.matmul %60, %61, %cst_42 {dimension_numbers = #tpu.dot_dimension_numbers<[1], [0], [0], [1], [0, 0, 1, 1], [], []>} : vector<16x90xf32>, vector<90x256xf32>, vector<16x256xf32> -> vector<16x256xf32>
    %c0_43 = arith.constant 0 : index
    %c0_44 = arith.constant 0 : index
    %63 = vector.load %arg6[%c0_43, %c0_44] : memref<16x1xf32, #tpu.memory_space<vmem>>, vector<16x1xf32>
    %64 = vector.broadcast %63 : vector<16x1xf32> to vector<16x256xf32>
    %65 = arith.addf %62, %64 : vector<16x256xf32>
    %cst_45 = arith.constant 0.000000e+00 : f32
    %66 = vector.broadcast %cst_45 : f32 to vector<16x256xf32>
    %67 = arith.cmpf oge, %65, %66 : vector<16x256xf32>
    %68 = vector.broadcast %59 : vector<1x1xf32> to vector<16x256xf32>
    %69 = arith.mulf %68, %65 : vector<16x256xf32>
    %70 = arith.select %67, %65, %69 : vector<16x256xi1>, vector<16x256xf32>
    %cst_46 = arith.constant 0.000000e+00 : f32
    %71 = vector.broadcast %cst_46 : f32 to vector<144x256xf32>
    %c0_47 = arith.constant 0 : index
    %c0_48 = arith.constant 0 : index
    %72 = vector.load %arg14[%c0_47, %c0_48] : memref<144x256xf32, #tpu.memory_space<vmem>>, vector<144x256xf32>
    tpu.vector_store %arg14[%c0_47, %c0_48], %71 {strides = array<i32>} : memref<144x256xf32, #tpu.memory_space<vmem>>, vector<144x256xf32>,
    %c0_49 = arith.constant 0 : index
    %c0_50 = arith.constant 0 : index
    %73 = vector.load %arg14[%c0_49, %c0_50] : memref<144x256xf32, #tpu.memory_space<vmem>>, vector<16x256xf32>
    tpu.vector_store %arg14[%c0_49, %c0_50], %70 {strides = array<i32>} : memref<144x256xf32, #tpu.memory_space<vmem>>, vector<16x256xf32>,
    %74 = vector.extract_strided_slice %70 {offsets = [0, 2], sizes = [16, 254], strides = [1, 1]} : vector<16x256xf32> to vector<16x254xf32>
    %c16 = arith.constant 16 : index
    %c0_51 = arith.constant 0 : index
    %75 = vector.load %arg14[%c16, %c0_51] : memref<144x256xf32, #tpu.memory_space<vmem>>, vector<16x254xf32>
    tpu.vector_store %arg14[%c16, %c0_51], %74 {strides = array<i32>} : memref<144x256xf32, #tpu.memory_space<vmem>>, vector<16x254xf32>,
    %76 = vector.extract_strided_slice %70 {offsets = [0, 4], sizes = [16, 252], strides = [1, 1]} : vector<16x256xf32> to vector<16x252xf32>
    %c32 = arith.constant 32 : index
    %c0_52 = arith.constant 0 : index
    %77 = vector.load %arg14[%c32, %c0_52] : memref<144x256xf32, #tpu.memory_space<vmem>>, vector<16x252xf32>
    tpu.vector_store %arg14[%c32, %c0_52], %76 {strides = array<i32>} : memref<144x256xf32, #tpu.memory_space<vmem>>, vector<16x252xf32>,
    %78 = vector.extract_strided_slice %70 {offsets = [0, 32], sizes = [16, 224], strides = [1, 1]} : vector<16x256xf32> to vector<16x224xf32>
    %c48 = arith.constant 48 : index
    %c0_53 = arith.constant 0 : index
    %79 = vector.load %arg14[%c48, %c0_53] : memref<144x256xf32, #tpu.memory_space<vmem>>, vector<16x224xf32>
    tpu.vector_store %arg14[%c48, %c0_53], %78 {strides = array<i32>} : memref<144x256xf32, #tpu.memory_space<vmem>>, vector<16x224xf32>,
    %80 = vector.extract_strided_slice %70 {offsets = [0, 34], sizes = [16, 222], strides = [1, 1]} : vector<16x256xf32> to vector<16x222xf32>
    %c64 = arith.constant 64 : index
    %c0_54 = arith.constant 0 : index
    %81 = vector.load %arg14[%c64, %c0_54] : memref<144x256xf32, #tpu.memory_space<vmem>>, vector<16x222xf32>
    tpu.vector_store %arg14[%c64, %c0_54], %80 {strides = array<i32>} : memref<144x256xf32, #tpu.memory_space<vmem>>, vector<16x222xf32>,
    %82 = vector.extract_strided_slice %70 {offsets = [0, 36], sizes = [16, 220], strides = [1, 1]} : vector<16x256xf32> to vector<16x220xf32>
    %c80_55 = arith.constant 80 : index
    %c0_56 = arith.constant 0 : index
    %83 = vector.load %arg14[%c80_55, %c0_56] : memref<144x256xf32, #tpu.memory_space<vmem>>, vector<16x220xf32>
    tpu.vector_store %arg14[%c80_55, %c0_56], %82 {strides = array<i32>} : memref<144x256xf32, #tpu.memory_space<vmem>>, vector<16x220xf32>,
    %84 = vector.extract_strided_slice %70 {offsets = [0, 64], sizes = [16, 192], strides = [1, 1]} : vector<16x256xf32> to vector<16x192xf32>
    %c96 = arith.constant 96 : index
    %c0_57 = arith.constant 0 : index
    %85 = vector.load %arg14[%c96, %c0_57] : memref<144x256xf32, #tpu.memory_space<vmem>>, vector<16x192xf32>
    tpu.vector_store %arg14[%c96, %c0_57], %84 {strides = array<i32>} : memref<144x256xf32, #tpu.memory_space<vmem>>, vector<16x192xf32>,
    %86 = vector.extract_strided_slice %70 {offsets = [0, 66], sizes = [16, 190], strides = [1, 1]} : vector<16x256xf32> to vector<16x190xf32>
    %c112 = arith.constant 112 : index
    %c0_58 = arith.constant 0 : index
    %87 = vector.load %arg14[%c112, %c0_58] : memref<144x256xf32, #tpu.memory_space<vmem>>, vector<16x190xf32>
    tpu.vector_store %arg14[%c112, %c0_58], %86 {strides = array<i32>} : memref<144x256xf32, #tpu.memory_space<vmem>>, vector<16x190xf32>,
    %88 = vector.extract_strided_slice %70 {offsets = [0, 68], sizes = [16, 188], strides = [1, 1]} : vector<16x256xf32> to vector<16x188xf32>
    %c128 = arith.constant 128 : index
    %c0_59 = arith.constant 0 : index
    %89 = vector.load %arg14[%c128, %c0_59] : memref<144x256xf32, #tpu.memory_space<vmem>>, vector<16x188xf32>
    tpu.vector_store %arg14[%c128, %c0_59], %88 {strides = array<i32>} : memref<144x256xf32, #tpu.memory_space<vmem>>, vector<16x188xf32>,
    %c2 = arith.constant 2 : index
    %c0_60 = arith.constant 0 : index
    %90 = vector.load %arg1[%c2, %c0_60] : memref<3x1xf32, #tpu.memory_space<vmem>>, vector<1x1xf32>
    %c0_61 = arith.constant 0 : index
    %c0_62 = arith.constant 0 : index
    %91 = vector.load %arg7[%c0_61, %c0_62] : memref<32x144xf32, #tpu.memory_space<vmem>>, vector<32x144xf32>
    %c0_63 = arith.constant 0 : index
    %c0_64 = arith.constant 0 : index
    %92 = vector.load %arg14[%c0_63, %c0_64] : memref<144x256xf32, #tpu.memory_space<vmem>>, vector<144x256xf32>
    %cst_65 = arith.constant dense<0.000000e+00> : vector<32x256xf32>
    %93 = tpu.matmul %91, %92, %cst_65 {dimension_numbers = #tpu.dot_dimension_numbers<[1], [0], [0], [1], [0, 0, 1, 1], [], []>} : vector<32x144xf32>, vector<144x256xf32>, vector<32x256xf32> -> vector<32x256xf32>
    %c0_66 = arith.constant 0 : index
    %c0_67 = arith.constant 0 : index
    %94 = vector.load %arg8[%c0_66, %c0_67] : memref<32x1xf32, #tpu.memory_space<vmem>>, vector<32x1xf32>
    %95 = vector.broadcast %94 : vector<32x1xf32> to vector<32x256xf32>
    %96 = arith.addf %93, %95 : vector<32x256xf32>
    %cst_68 = arith.constant 0.000000e+00 : f32
    %97 = vector.broadcast %cst_68 : f32 to vector<32x256xf32>
    %98 = arith.cmpf oge, %96, %97 : vector<32x256xf32>
    %99 = vector.broadcast %90 : vector<1x1xf32> to vector<32x256xf32>
    %100 = arith.mulf %99, %96 : vector<32x256xf32>
    %101 = arith.select %98, %96, %100 : vector<32x256xi1>, vector<32x256xf32>
    %c0_69 = arith.constant 0 : index
    %c0_70 = arith.constant 0 : index
    %102 = vector.load %arg9[%c0_69, %c0_70] : memref<5x32xf32, #tpu.memory_space<vmem>>, vector<5x32xf32>
    %cst_71 = arith.constant dense<0.000000e+00> : vector<5x256xf32>
    %103 = tpu.matmul %102, %101, %cst_71 {dimension_numbers = #tpu.dot_dimension_numbers<[1], [0], [0], [1], [0, 0, 1, 1], [], []>} : vector<5x32xf32>, vector<32x256xf32>, vector<5x256xf32> -> vector<5x256xf32>
    %c0_72 = arith.constant 0 : index
    %c0_73 = arith.constant 0 : index
    %104 = vector.load %arg10[%c0_72, %c0_73] : memref<5x1xf32, #tpu.memory_space<vmem>>, vector<5x1xf32>
    %105 = vector.broadcast %104 : vector<5x1xf32> to vector<5x256xf32>
    %106 = arith.addf %103, %105 : vector<5x256xf32>
    %c0_74 = arith.constant 0 : index
    %c0_75 = arith.constant 0 : index
    %c0_76 = arith.constant 0 : index
    %107 = vector.load %arg11[%c0_74, %c0_75, %c0_76] : memref<1x5x256xf32, #tpu.memory_space<vmem>>, vector<1x5x256xf32>
    %108 = vector.shape_cast %107 : vector<1x5x256xf32> to vector<5x256xf32>
    %109 = vector.shape_cast %106 : vector<5x256xf32> to vector<1x5x256xf32>
    tpu.vector_store %arg11[%c0_74, %c0_75, %c0_76], %109 {strides = array<i32>} : memref<1x5x256xf32, #tpu.memory_space<vmem>>, vector<1x5x256xf32>,
    %110 = vector.extract_strided_slice %106 {offsets = [0, 0], sizes = [1, 256], strides = [1, 1]} : vector<5x256xf32> to vector<1x256xf32>
    %111 = arith.negf %110 : vector<1x256xf32>
    %112 = math.exp %111 : vector<1x256xf32>
    %cst_77 = arith.constant 1.000000e+00 : f32
    %113 = vector.broadcast %cst_77 : f32 to vector<1x256xf32>
    %114 = arith.addf %113, %112 : vector<1x256xf32>
    %115 = arith.divf %113, %114 : vector<1x256xf32>
    %c0_78 = arith.constant 0 : index
    %c0_79 = arith.constant 0 : index
    %c0_80 = arith.constant 0 : index
    %116 = vector.load %arg11[%c0_78, %c0_79, %c0_80] : memref<1x5x256xf32, #tpu.memory_space<vmem>>, vector<1x1x256xf32>
    %117 = vector.shape_cast %116 : vector<1x1x256xf32> to vector<1x256xf32>
    %118 = vector.shape_cast %115 : vector<1x256xf32> to vector<1x1x256xf32>
    tpu.vector_store %arg11[%c0_78, %c0_79, %c0_80], %118 {strides = array<i32>} : memref<1x5x256xf32, #tpu.memory_space<vmem>>, vector<1x1x256xf32>,
    return
  }
  func.func @transform_0(%arg0: i32) -> (i32, i32) {
    %c0_i32 = arith.constant 0 : i32
    %c0_i32_0 = arith.constant 0 : i32
    %c0_i32_1 = arith.constant 0 : i32
    return %c0_i32, %c0_i32_0 : i32, i32
  }
  func.func @transform_1(%arg0: i32) -> (i32, i32, i32) {
    %c0_i32 = arith.constant 0 : i32
    %c0_i32_0 = arith.constant 0 : i32
    %c0_i32_1 = arith.constant 0 : i32
    return %arg0, %c0_i32, %c0_i32_0 : i32, i32, i32
  }
  func.func @transform_2(%arg0: i32) -> (i32, i32) {
    %c0_i32 = arith.constant 0 : i32
    %c0_i32_0 = arith.constant 0 : i32
    %c0_i32_1 = arith.constant 0 : i32
    return %c0_i32, %c0_i32_0 : i32, i32
  }
  func.func @transform_3(%arg0: i32) -> (i32, i32) {
    %c0_i32 = arith.constant 0 : i32
    %c0_i32_0 = arith.constant 0 : i32
    %c0_i32_1 = arith.constant 0 : i32
    return %c0_i32, %c0_i32_0 : i32, i32
  }
  func.func @transform_4(%arg0: i32) -> (i32, i32) {
    %c0_i32 = arith.constant 0 : i32
    %c0_i32_0 = arith.constant 0 : i32
    %c0_i32_1 = arith.constant 0 : i32
    return %c0_i32, %c0_i32_0 : i32, i32
  }
  func.func @transform_5(%arg0: i32) -> (i32, i32) {
    %c0_i32 = arith.constant 0 : i32
    %c0_i32_0 = arith.constant 0 : i32
    %c0_i32_1 = arith.constant 0 : i32
    return %c0_i32, %c0_i32_0 : i32, i32
  }
  func.func @transform_6(%arg0: i32) -> (i32, i32) {
    %c0_i32 = arith.constant 0 : i32
    %c0_i32_0 = arith.constant 0 : i32
    %c0_i32_1 = arith.constant 0 : i32
    return %c0_i32, %c0_i32_0 : i32, i32
  }
  func.func @transform_7(%arg0: i32) -> (i32, i32) {
    %c0_i32 = arith.constant 0 : i32
    %c0_i32_0 = arith.constant 0 : i32
    %c0_i32_1 = arith.constant 0 : i32
    return %c0_i32, %c0_i32_0 : i32, i32
  }
  func.func @transform_8(%arg0: i32) -> (i32, i32) {
    %c0_i32 = arith.constant 0 : i32
    %c0_i32_0 = arith.constant 0 : i32
    %c0_i32_1 = arith.constant 0 : i32
    return %c0_i32, %c0_i32_0 : i32, i32
  }
  func.func @transform_9(%arg0: i32) -> (i32, i32) {
    %c0_i32 = arith.constant 0 : i32
    %c0_i32_0 = arith.constant 0 : i32
    %c0_i32_1 = arith.constant 0 : i32
    return %c0_i32, %c0_i32_0 : i32, i32
  }
  func.func @transform_10(%arg0: i32) -> (i32, i32, i32) {
    %c0_i32 = arith.constant 0 : i32
    %c0_i32_0 = arith.constant 0 : i32
    %c0_i32_1 = arith.constant 0 : i32
    return %arg0, %c0_i32, %c0_i32_0 : i32, i32, i32
  }
}

</mosaic_0001>

<bundles_post_ra>
// kernel: pnet_forward.1
= control target key start
LH: loop header
LB: loop body
LE: loop exit
PB: predicated region body
PF: predicated region fallthrough
CT: control target
= control target key end

     0   :  { %s1812_s13 = smov 0   ;;  %s2145_s0 = inlined_call_operand.vmem [shape: f32[3,1], index: 0, kind: input, shape index: {}]   ;;  %s2146_s1 = inlined_call_operand.vmem [shape: f32[2,3,256], index: 1, kind: input, shape index: {}]   ;;  %s2147_s2 = inlined_call_operand.vmem [shape: f32[10,27], index: 2, kind: input, shape index: {}]   ;;  %s2148_s3 = inlined_call_operand.vmem [shape: f32[10,1], index: 3, kind: input, shape index: {}]   ;;  %s2149_s4 = inlined_call_operand.vmem [shape: f32[16,90], index: 4, kind: input, shape index: {}]   ;;  %s2150_s5 = inlined_call_operand.vmem [shape: f32[16,1], index: 5, kind: input, shape index: {}]   ;;  %s2151_s6 = inlined_call_operand.vmem [shape: f32[32,144], index: 6, kind: input, shape index: {}]   ;;  %s2152_s7 = inlined_call_operand.vmem [shape: f32[32,1], index: 7, kind: input, shape index: {}]   ;;  %s2153_s8 = inlined_call_operand.vmem [shape: f32[5,32], index: 8, kind: input, shape index: {}]   ;;  %s2154_s9 = inlined_call_operand.vmem [shape: f32[5,1], index: 9, kind: input, shape index: {}]   ;;  %s2155_s10 = inlined_call_operand.vmem [shape: f32[2,5,256], index: 10, kind: output, shape index: {}]  }
   0x1 LB: > { %s1581_s14 = sadd.s32 4294967295, %s1738_s13   ;;  %p1585_p0 = scmp.ge.s32.totalorder %s1738_s13, 1  ;;  %s1738_s13 = sphi %s1812_s13, %s20_s13  }
   0x2   : > { %p312_p1 = scmp.lt.s32.totalorder %s1738_s13, 3 }
   0x4   : > { %p313_p2 = pnand %p1585_p0, %p312_p1 }
   0x5   : > { %p1822_p3 = scmp.lt.s32.totalorder (!%p313_p2), %s1581_s14, 1  ;;  %v1740_v0 = vmov (!%p313_p2), 0.0   ;;  %s1741_s20 = smov (!%p313_p2), 126   ;;  %v492_v16 = vld [vmem:[%s2148_s3] sm:$0xff] (!%p313_p2)  ;;  %v493_v17 = vld [vmem:[%s2148_s3 + $0x8] sm:$0x3] (!%p313_p2) }
   0x6   : > { %316 = sbr.rel (%p313_p2) target bundleno = 1710 (0x6ae), region = 60  ;;  %361 = vst [vmem:[#allocation2] sm:$0xff] (!%p313_p2), %v1740_v0  ;;  %362 = vst [vmem:[#allocation2 + $0x8] sm:$0xff] (!%p313_p2), %v1740_v0  ;;  %582 = vmatprep.mubr.f32.mxu1 (!%p313_p2), %v1740_v0  ;;  %s1742_s21 = smov (!%p313_p2), 127   ;;  %v481_v18 = vld [vmem:[%s2145_s0] sm:$0x1] (!%p313_p2) }
   0x7   : > { %363 = vst [vmem:[#allocation2 + $0x10] sm:$0xff] (!%p313_p2), %v1740_v0  ;;  %364 = vst [vmem:[#allocation2 + $0x18] sm:$0xff] (!%p313_p2), %v1740_v0  ;;  %s1743_s22 = smov (!%p313_p2), 112   ;;  %s1744_s23 = smov (!%p313_p2), 111   ;;  %v1749_v19 = vmov (!%p313_p2), 0   ;;  %vm393_vm0 = vcmask (!%p313_p2), 1031168  }
   0x8   : > { %365 = vst [vmem:[#allocation2 + $0x20] sm:$0xff] (!%p313_p2), %v1740_v0  ;;  %366 = vst [vmem:[#allocation2 + $0x28] sm:$0xff] (!%p313_p2), %v1740_v0  ;;  %s1745_s24 = smov (!%p313_p2), 110   ;;  %s1746_s25 = smov (!%p313_p2), 96   ;;  %1720 = vset.pattern.permute.xlu0 (!%p313_p2), %v1749_v19  ;;  %1721 = vset.pattern.permute.xlu1 (!%p313_p2), %v1749_v19  ;;  %vm398_vm1 = vcmask (!%p313_p2), 1031174   ;;  %vm401_vm2 = vcmask (!%p313_p2), 1024000  }
   0x9   : > { %367 = vst [vmem:[#allocation2 + $0x30] sm:$0x7] (!%p313_p2), %v1740_v0  ;;  %368 = vst [vmem:[#allocation2 + $0x38] sm:$0x7] (!%p313_p2), %v1740_v0  ;;  %s1747_s26 = smov (!%p313_p2), 95   ;;  %s1748_s27 = smov (!%p313_p2), 94  }
   0xa   : > { %656 = vst [vmem:[#allocation3 + $0x8] sm:$0xff] (!%p313_p2), %v1740_v0  ;;  %657 = vst [vmem:[#allocation3 + $0x10] sm:$0xff] (!%p313_p2), %v1740_v0  ;;  %vm409_vm3 = vcmask (!%p313_p2), 916480   ;;  %vm414_vm4 = vcmask (!%p313_p2), 912385   ;;  %vm380_vm5 = vcmask (!%p313_p2), 1039360   ;;  %vm385_vm6 = vcmask (!%p313_p2), 1037315  }
   0xb   : > { %658 = vst [vmem:[#allocation3 + $0x18] sm:$0xff] (!%p313_p2), %v1740_v0  ;;  %659 = vst [vmem:[#allocation3 + $0x20] sm:$0xff] (!%p313_p2), %v1740_v0  ;;  %vm426_vm7 = vcmask (!%p313_p2), 907268   ;;  %vm421_vm8 = vcmask (!%p313_p2), 908288   ;;  %vm439_vm9 = vcmask (!%p313_p2), 900103   ;;  %vm442_vm10 = vcmask (!%p313_p2), 893952  }
   0xc   : > { %660 = vst [vmem:[#allocation3 + $0x28] sm:$0xff] (!%p313_p2), %v1740_v0  ;;  %661 = vst [vmem:[#allocation3 + $0x30] sm:$0xff] (!%p313_p2), %v1740_v0  ;;  %vm434_vm11 = vcmask (!%p313_p2), 900096   ;;  %vm455_vm12 = vcmask (!%p313_p2), 782338   ;;  %vm450_vm13 = vcmask (!%p313_p2), 785408   ;;  %vm468_vm14 = vcmask (!%p313_p2), 777221  }
   0xd   : > { %662 = vst [vmem:[#allocation3 + $0x38] sm:$0xff] %v1740_v0  ;;  %664 = vst [vmem:[#allocation3 + $0x48] sm:$0xff] %v1740_v0  ;;  %s2158_s14 = smov (!%p1822_p3, %s1581_s14), 1  ;;  %vm463_vm15 = vcmask 777216   ;;  %v482_v56 = vld [vmem:[%s2147_s2] sm:$0xff]  ;;  %s1755_s28 = smov 62  }
   0xe   : > { %666 = vst [vmem:[#allocation3 + $0x58] sm:$0xff] %v1740_v0  ;;  %667 = vst [vmem:[#allocation3 + $0x60] sm:$0xff] %v1740_v0  ;;  %s1607_s16 = sshll.u32 %s2158_s14, 3  ;;  %v483_v57 = vld [vmem:[%s2147_s2 + $0x8] sm:$0x3]  ;;  %s1608_s17 = sshll.u32 %s2158_s14, 4 }
   0xf   : > { %668 = vst [vmem:[#allocation3 + $0x68] sm:$0xff] %v1740_v0  ;;  %669 = vst [vmem:[#allocation3 + $0x70] sm:$0xff] %v1740_v0  ;;  %s354_s19 = scalar_lea.vmem %s2146_s1, %s1607_s16 }
  0x10   : > { %670 = vst [vmem:[#allocation3 + $0x78] sm:$0xff] %v1740_v0  ;;  %671 = vst [vmem:[#allocation3 + $0x80] sm:$0xff] %v1740_v0  ;;  %v360_v1 = vld [vmem:[%s354_s19] sm:$0x77] }
  0x11   : > { %672 = vst [vmem:[#allocation3 + $0x88] sm:$0xff] %v1740_v0  ;;  %674 = vst [vmem:[#allocation3 + $0x98] sm:$0xff] %v1740_v0  ;;  %v387_v2 = vrot.slane %v360_v1, 2  ;;  %v374_v3 = vrot.slane %v360_v1, 5  ;;  %v370_v4 = vcombine.high %v360_v1, %v360_v1  ;;  %v403_v5 = vrot.slane %v360_v1, 7 }
  0x12   : > { %676 = vst [vmem:[#allocation3 + $0xa8] sm:$0xff] %v1740_v0  ;;  %677 = vst [vmem:[#allocation3 + $0xb0] sm:$0x3] %v1740_v0  ;;  %v416_v9 = vcombine.low %v360_v1, %v360_v1  ;;  %v428_v11 = vrot.slane %v360_v1, 1  ;;  %v444_v13 = vrot.slane %v360_v1, 6  ;;  %v457_v15 = vrot.slane %v360_v1, 3 }
  0x13   : > { %678 = vst [vmem:[#allocation3 + $0xb8] sm:$0x3] %v1740_v0  ;;  %1024 = vst [vmem:[#allocation4 + $0x28] sm:$0xff] %v1740_v0  ;;  %389 = vrot.lane.b32.xlu1 %v387_v2, %s1741_s20  ;;  %376 = vrot.lane.b32.xlu0 %v374_v3, %s1742_s21  ;;  %v388_v6 = vrot.slane %v370_v4, 2  ;;  %v404_v7 = vrot.slane %v370_v4, 7  ;;  %v375_v8 = vrot.slane %v370_v4, 5 }
  0x14   : > { %1026 = vst [vmem:[#allocation4 + $0x38] sm:$0xff] %v1740_v0  ;;  %1028 = vst [vmem:[#allocation4 + $0x48] sm:$0xff] %v1740_v0  ;;  %v429_v10 = vrot.slane %v370_v4, 1  ;;  %v445_v12 = vrot.slane %v370_v4, 6  ;;  %v458_v14 = vrot.slane %v370_v4, 3 }
  0x15   : > { %1030 = vst [vmem:[#allocation4 + $0x58] sm:$0xff] %v1740_v0  ;;  %1032 = vst [vmem:[#allocation4 + $0x68] sm:$0xff] %v1740_v0 }
  0x16   : > { %1034 = vst [vmem:[#allocation4 + $0x78] sm:$0xff] %v1740_v0  ;;  %1036 = vst [vmem:[#allocation4 + $0x88] sm:$0xff] %v1740_v0 }
  0x17   : > { %1038 = vst [vmem:[#allocation4 + $0x98] sm:$0xff] %v1740_v0  ;;  %1040 = vst [vmem:[#allocation4 + $0xa8] sm:$0xff] %v1740_v0  ;;  %405 = vrot.lane.b32.xlu0 %v403_v5, %s1743_s22  ;;  %391 = vrot.lane.b32.xlu1 %v388_v6, %s1741_s20 }
  0x18   : > { %1042 = vst [vmem:[#allocation4 + $0xb8] sm:$0xff] %v1740_v0  ;;  %1044 = vst [vmem:[#allocation4 + $0xc8] sm:$0xff] %v1740_v0 }
  0x19   : > { %1046 = vst [vmem:[#allocation4 + $0xd8] sm:$0xff] %v1740_v0  ;;  %1048 = vst [vmem:[#allocation4 + $0xe8] sm:$0xff] %v1740_v0 }
  0x1a   : > { %1050 = vst [vmem:[#allocation4 + $0xf8] sm:$0xff] %v1740_v0  ;;  %1052 = vst [vmem:[#allocation4 + $0x108] sm:$0xff] %v1740_v0 }
  0x1b   : > { %1054 = vst [vmem:[#allocation4 + $0x118] sm:$0xff] %v1740_v0  ;;  %372 = vst [vmem:[#allocation2] sm:$0x7] %v360_v1  ;;  %407 = vrot.lane.b32.xlu1 %v404_v7, %s1743_s22  ;;  %378 = vrot.lane.b32.xlu0 %v375_v8, %s1742_s21 }
  0x1c   : > { %373 = vst [vmem:[#allocation2 + $0x8] sm:$0x7] %v370_v4  ;;  %1689 = vpush %v481_v18 }
  0x1f   : > { %419 = vrot.lane.b32.xlu1 %v360_v1, %s1744_s23  ;;  %417 = vrot.lane.b32.xlu0 %v416_v9, %s1744_s23 }
  0x23   : > { %432 = vrot.lane.b32.xlu1 %v429_v10, %s1745_s24  ;;  %430 = vrot.lane.b32.xlu0 %v428_v11, %s1745_s24  ;;  %s1753_s24 = smov 92  }
  0x27   : > { %448 = vrot.lane.b32.xlu1 %v445_v12, %s1746_s25  ;;  %446 = vrot.lane.b32.xlu0 %v444_v13, %s1746_s25 }
  0x2b   : > { %461 = vrot.lane.b32.xlu1 %v458_v14, %s1747_s26  ;;  %459 = vrot.lane.b32.xlu0 %v457_v15, %s1747_s26  ;;  %s1754_s26 = smov 64  }
  0x2f   : > { %472 = vrot.lane.b32.xlu1 %v370_v4, %s1748_s27  ;;  %470 = vrot.lane.b32.xlu0 %v360_v1, %s1748_s27 }
  0x33   : > { %496 = vperm.xlu0 %1720, %v492_v16   ;;  %501 = vperm.xlu1 %1721, %v493_v17  }
  0x4d   : > { %s1690_s23 = spop %1689 }
  0x4e   : > { %v601_v60 = vstv %s1690_s23  ;;  %s359_s23 = scalar_lea.vmem %s2155_s10, %s1608_s17 }
  0x85   : > { %v390_v20 = vpop.permute.xlu1 %389  ;;  %v377_v21 = vpop.permute.xlu0 %376 }
  0x89   : > { %v406_v22 = vpop.permute.xlu0 %405  ;;  %v392_v23 = vpop.permute.xlu1 %391 }
  0x8a   : > { %v394_v24 = vsel %vm393_vm0, %v390_v20, %v392_v23  ;;  %399 = vst.msk [vmem:[#allocation2 + $0x8] sm:$0xc0] %vm398_vm1, %v392_v23  ;;  %vm479_vm1 = vcmask 763904  }
  0x8b   : > { %402 = vst.msk [vmem:[#allocation2 + $0x18] sm:$0x1] %vm401_vm2, %v392_v23  ;;  %397 = vst [vmem:[#allocation2 + $0x10] ss:$-12 sps:$4 sm:$0xc1] %v394_v24   ;;  %vm474_vm2 = vcmask 769024  }
  0x8d   : > { %v408_v25 = vpop.permute.xlu1 %407  ;;  %v379_v26 = vpop.permute.xlu0 %378 }
  0x8e   : > { %v410_v27 = vsel %vm409_vm3, %v406_v22, %v408_v25  ;;  %415 = vst.msk [vmem:[#allocation2 + $0x18] sm:$0xe] %vm414_vm4, %v408_v25  ;;  %v381_v28 = vsel %vm380_vm5, %v377_v21, %v379_v26  ;;  %vm511_vm4 = vcmask 1042432  }
  0x8f   : > { %386 = vst.msk [vmem:[#allocation2 + $0x8] sm:$0x38] %vm385_vm6, %v379_v26  ;;  %413 = vst [vmem:[#allocation2 + $0x10] sm:$0xe] %v410_v27  ;;  %vm1750_vm6 = vmmov 1  }
  0x90   : > { %384 = vst [vmem:[#allocation2] sm:$0x38] %v381_v28 }
  0x91   : > { %v420_v29 = vpop.permute.xlu1 %419  ;;  %v418_v30 = vpop.permute.xlu0 %417 }
  0x92   : > { %427 = vst.msk [vmem:[#allocation2 + $0x18] sm:$0x70] %vm426_vm7, %v420_v29  ;;  %v422_v31 = vsel %vm421_vm8, %v418_v30, %v420_v29  ;;  %vm1614_vm7 = vmpackc.low %vm511_vm4, %vm1750_vm6  ;;  %vm869_vm4 = vcmask 351232  }
  0x93   : > { %425 = vst [vmem:[#allocation2 + $0x10] sm:$0x70] %v422_v31 }
  0x95   : > { %v433_v32 = vpop.permute.xlu1 %432  ;;  %v431_v33 = vpop.permute.xlu0 %430 }
  0x96   : > { %440 = vst.msk [vmem:[#allocation2 + $0x18] sm:$0x80] %vm439_vm9, %v433_v32  ;;  %v435_v34 = vsel %vm434_vm11, %v431_v33, %v433_v32  ;;  %v485_v40 = vld [vmem:[#allocation2 + $0x8] sm:$0xff]  ;;  %vm504_vm9 = vcmask 220160  }
  0x97   : > { %443 = vst.msk [vmem:[#allocation2 + $0x28] sm:$0x3] %vm442_vm10, %v433_v32  ;;  %438 = vst [vmem:[#allocation2 + $0x20] ss:$-12 sps:$4 sm:$0x83] %v435_v34   ;;  %v484_v44 = vld [vmem:[#allocation2] sm:$0xff] }
  0x99   : > { %v449_v35 = vpop.permute.xlu1 %448  ;;  %v447_v36 = vpop.permute.xlu0 %446 }
  0x9a   : > { %456 = vst.msk [vmem:[#allocation2 + $0x28] sm:$0x1c] %vm455_vm12, %v449_v35  ;;  %v451_v37 = vsel %vm450_vm13, %v447_v36, %v449_v35 }
  0x9b   : > { %454 = vst [vmem:[#allocation2 + $0x20] sm:$0x1c] %v451_v37 }
  0x9d   : > { %v462_v38 = vpop.permute.xlu1 %461  ;;  %v460_v39 = vpop.permute.xlu0 %459  ;;  %v487_v41 = vld [vmem:[#allocation2 + $0x18] sm:$0xff] }
  0x9e   : > { %469 = vst.msk [vmem:[#allocation2 + $0x28] sm:$0xe0] %vm468_vm14, %v462_v38  ;;  %v464_v42 = vsel %vm463_vm15, %v460_v39, %v462_v38  ;;  %v1609_v43 = vpack.c.bf16 %v487_v41, %v485_v40  ;;  %v486_v45 = vld [vmem:[#allocation2 + $0x10] sm:$0xff]  ;;  %vm682_vm15 = vcmask 902144  }
  0x9f   : > { %467 = vst [vmem:[#allocation2 + $0x20] sm:$0xe0] %v464_v42  ;;  %v1611_v46 = vpack.c.bf16 %v486_v45, %v484_v44 }
  0xa0   : > { %1610 = vmatprep.subr.bf16.mxu1 %v1609_v43 }
  0xa1   : > { %v473_v47 = vpop.permute.xlu1 %472  ;;  %v471_v48 = vpop.permute.xlu0 %470  ;;  %1612 = vmatpush1.bf16.msra.mxu1 %v1611_v46 }
  0xa2   : > { %480 = vst.msk [vmem:[#allocation2 + $0x38] sm:$0x7] %vm479_vm1, %v473_v47  ;;  %v475_v49 = vsel %vm474_vm2, %v471_v48, %v473_v47  ;;  %vm785_vm1 = vcmask 629760  }
  0xa3   : > { %478 = vst [vmem:[#allocation2 + $0x30] sm:$0x7] %v475_v49 }
  0xa5   : > { %v489_v50 = vld [vmem:[#allocation2 + $0x28] sm:$0xff] }
  0xa6   : > { %v488_v53 = vld [vmem:[#allocation2 + $0x20] sm:$0xff] }
  0xa9   : > { %v491_v51 = vld [vmem:[#allocation2 + $0x38] sm:$0x7] }
  0xaa   : > { %v1613_v52 = vpack.c.bf16 %v491_v51, %v489_v50  ;;  %v490_v54 = vld [vmem:[#allocation2 + $0x30] sm:$0x7] }
  0xab   : > { %v1616_v55 = vpack.c.bf16 %v490_v54, %v488_v53  ;;  %v901_v53 = vld [vmem:[%s2150_s5] sm:$0xff] }
  0xac   : > { %1615 = vmatprep.subr.msk.bf16.mxu1 %vm1614_vm7, %v1613_v52  ;;  %v902_v52 = vld [vmem:[%s2150_s5 + $0x8] sm:$0xff]  ;;  %v874_v54 = vld [vmem:[%s2145_s0 + $0x1] sm:$0x1] }
  0xad   : > { %1618 = vmatpush1.bf16.msk.msra.mxu1 %vm1614_vm7, %v1616_v55  ;;  %1691 = vpush %v874_v54  ;;  %vm861_vm7 = vcmask 490496  }
  0xb0   : > { %1592 = vmatmul.mubr.msk.f32.vlgmr.msra.gmra.mrb[0].mxu1 %vm504_vm9, %v482_v56 }
  0xb1   : > { %588 = vmatprep.mubr.f32.mxu1 %v1740_v0 }
  0xb2   : > { %v497_v58 = vpop.permute.xlu0 %496  ;;  %v502_v1 = vpop.permute.xlu1 %501 }
  0xb4   : > { %1593 = vmatmul.mubr.msk.f32.gmra.mrb[2].mxu1 %vm504_vm9, %v483_v57  ;;  %vm710_vm9 = vcmask 891906  }
  0xb5   : > { %990 = vmatprep.mubr.f32.mxu1 %v1740_v0 }
  0xde   : > { %s1692_s29 = spop %1691 }
 0x183   : > { %v584_v59 = vpop.f32.mrb[0].mxu1 }
 0x184   : > { %v585_v61 = vadd.f32 %v584_v59, %v497_v58  ;;  %v586_v62 = vpop.f32.mrb[1].mxu1 }
 0x185   : > { %v587_v63 = vadd.f32 %v586_v62, %v497_v58 }
 0x186   : > { %v603_v2 = vmul.f32 %v601_v60, %v585_v61  ;;  %vm595_vm10 = vcmp.ge.f32.partialorder %v585_v61, 0.0 }
 0x187   : > { %v604_v3 = vmul.f32 %v601_v60, %v587_v63  ;;  %v590_v4 = vpop.f32.mrb[2].mxu1  ;;  %vm596_vm11 = vcmp.ge.f32.partialorder %v587_v63, 0.0 }
 0x188   : > { %v591_v5 = vadd.f32 %v590_v4, %v502_v1  ;;  %v592_v6 = vpop.f32.mrb[3].mxu1  ;;  %v607_v7 = vsel %vm595_vm10, %v585_v61, %v603_v2  ;;  %vm738_vm10 = vcmask 875524  }
 0x189   : > { %v593_v8 = vadd.f32 %v592_v6, %v502_v1  ;;  %615 = vrot.lane.b32.xlu1 %v607_v7, %s1742_s21  ;;  %v608_v9 = vsel %vm596_vm11, %v587_v63, %v604_v3  ;;  %vm730_vm11 = vcmask 1014784  }
 0x18a   : > { %v605_v10 = vmul.f32 %v601_v60, %v591_v5  ;;  %617 = vrot.lane.b32.xlu0 %v608_v9, %s1742_s21  ;;  %vm597_vm12 = vcmp.ge.f32.partialorder %v591_v5, 0.0 }
 0x18b   : > { %v606_v11 = vmul.f32 %v601_v60, %v593_v8  ;;  %vm598_vm14 = vcmp.ge.f32.partialorder %v593_v8, 0.0 }
 0x18c   : > { %v609_v12 = vsel %vm597_vm12, %v591_v5, %v605_v10  ;;  %vm765_vm12 = vcmask 646150  }
 0x18d   : > { %619 = vrot.lane.b32.xlu1 %v609_v12, %s1742_s21  ;;  %v610_v13 = vsel %vm598_vm14, %v593_v8, %v606_v11  ;;  %vm806_vm14 = vcmask 613378  }
 0x18e   : > { %621 = vrot.lane.b32.xlu0 %v610_v13, %s1742_s21  ;;  %s1751_s21 = smov 60  }
 0x1fb   : > { %v616_v14 = vpop.permute.xlu1 %615 }
 0x1fc   : > { %v618_v15 = vpop.permute.xlu0 %617 }
 0x1fd   : > { %v623_v16 = vsel %vm380_vm5, %v616_v14, %v618_v15  ;;  %v630_v17 = vmax.f32 %v608_v9, %v618_v15 }
 0x1fe   : > { %v629_v18 = vmax.f32 %v607_v7, %v623_v16 }
 0x1ff   : > { %639 = vrot.lane.b32.xlu0 %v630_v17, %s1743_s22  ;;  %v620_v19 = vpop.permute.xlu1 %619 }
 0x200   : > { %v622_v20 = vpop.permute.xlu0 %621  ;;  %637 = vrot.lane.b32.xlu1 %v629_v18, %s1743_s22 }
 0x201   : > { %v624_v21 = vsel %vm380_vm5, %v620_v19, %v622_v20  ;;  %v632_v22 = vmax.f32 %v610_v13, %v622_v20  ;;  %vm715_vm5 = vcmask 1043456  }
 0x202   : > { %v631_v23 = vmax.f32 %v609_v12, %v624_v21 }
 0x203   : > { %643 = vrot.lane.b32.xlu0 %v632_v22, %s1743_s22 }
 0x204   : > { %641 = vrot.lane.b32.xlu1 %v631_v23, %s1743_s22  ;;  %s1752_s22 = smov 124  }
 0x271   : > { %v640_v24 = vpop.permute.xlu0 %639 }
 0x272   : > { %v652_v25 = vmax.f32 %v630_v17, %v640_v24  ;;  %v638_v26 = vpop.permute.xlu1 %637 }
 0x273   : > { %v645_v27 = vsel %vm409_vm3, %v638_v26, %v640_v24 }
 0x274   : > { %680 = vst.msk [vmem:[#allocation3 + $0x8] sm:$0xff] %vm421_vm8, %v652_v25  ;;  %v1926_v28 = vmax.f32 %v629_v18, %v645_v27  ;;  %772 = vrot.lane.b32.xlu0 %v652_v25, %s1748_s27  ;;  %v690_v34 = vrot.slane %v652_v25, 6  ;;  %v717_v36 = vrot.slane %v652_v25, 4  ;;  %v745_v38 = vrot.slane %v652_v25, 2 }
 0x275   : > { %v644_v29 = vpop.permute.xlu0 %643  ;;  %vm743_vm8 = vcmask 1045504  }
 0x276   : > { %v654_v30 = vmax.f32 %v632_v22, %v644_v29  ;;  %770 = vrot.lane.b32.xlu1 %v1926_v28, %s1748_s27  ;;  %v642_v31 = vpop.permute.xlu1 %641  ;;  %v689_v35 = vrot.slane %v1926_v28, 6  ;;  %v716_v37 = vrot.slane %v1926_v28, 4  ;;  %v744_v39 = vrot.slane %v1926_v28, 2 }
 0x277   : > { %v646_v32 = vsel %vm409_vm3, %v642_v31, %v644_v29  ;;  %vm688_vm3 = vcmask 1041408  }
 0x278   : > { %v653_v33 = vmax.f32 %v631_v23, %v646_v32  ;;  %855 = vrot.lane.b32.xlu0 %v652_v25, %s1751_s21  ;;  %683 = vst.msk [vmem:[#allocation3 + $0x18] sm:$0x3] %vm682_vm15, %v654_v30  ;;  %v693_v40 = vrot.slane %v654_v30, 6  ;;  %v720_v43 = vrot.slane %v654_v30, 4  ;;  %v748_v47 = vrot.slane %v654_v30, 2 }
 0x279   : > { %vm798_vm15 = vcmask 752640  }
 0x27a   : > { %681 = vst [vmem:[#allocation3 + $0x10] sm:$0x3] %v653_v33  ;;  %853 = vrot.lane.b32.xlu1 %v1926_v28, %s1751_s21  ;;  %v691_v41 = vrot.slane %v653_v33, 6  ;;  %v694_v42 = vsel %vm688_vm3, %v690_v34, %v693_v40  ;;  %v718_v45 = vrot.slane %v653_v33, 4  ;;  %v721_v46 = vsel %vm715_vm5, %v717_v36, %v720_v43 }
 0x27b   : > { %v746_v49 = vrot.slane %v653_v33, 2  ;;  %v749_v50 = vsel %vm743_vm8, %v745_v38, %v748_v47  ;;  %v878_v5 = vld [vmem:[#allocation3 + $0x8] sm:$0xff] }
 0x27c   : > { %697 = vrot.lane.b32.xlu0 %v690_v34, %s1741_s20  ;;  %v692_v44 = vsel %vm688_vm3, %v689_v35, %v691_v41  ;;  %v719_v48 = vsel %vm715_vm5, %v716_v37, %v718_v45  ;;  %vm827_vm5 = vcmask 384004  }
 0x27d   : > { %v747_v51 = vsel %vm743_vm8, %v744_v39, %v746_v49  ;;  %vm819_vm8 = vcmask 523264  }
 0x27e   : > { %695 = vrot.lane.b32.xlu1 %v689_v35, %s1741_s20 }
 0x280   : > { %724 = vrot.lane.b32.xlu0 %v717_v36, %s1752_s22 }
 0x282   : > { %722 = vrot.lane.b32.xlu1 %v716_v37, %s1752_s22 }
 0x284   : > { %752 = vrot.lane.b32.xlu0 %v745_v38, %s1746_s25 }
 0x286   : > { %750 = vrot.lane.b32.xlu1 %v744_v39, %s1746_s25 }
 0x288   : > { %792 = vrot.lane.b32.xlu0 %v690_v34, %s1753_s24 }
 0x28a   : > { %790 = vrot.lane.b32.xlu1 %v689_v35, %s1753_s24 }
 0x28c   : > { %813 = vrot.lane.b32.xlu0 %v717_v36, %s1754_s26 }
 0x28e   : > { %811 = vrot.lane.b32.xlu1 %v716_v37, %s1754_s26 }
 0x290   : > { %834 = vrot.lane.b32.xlu0 %v745_v38, %s1755_s28 }
 0x292   : > { %832 = vrot.lane.b32.xlu1 %v744_v39, %s1755_s28 }
 0x294   : > { %776 = vrot.lane.b32.xlu0 %v654_v30, %s1748_s27 }
 0x296   : > { %774 = vrot.lane.b32.xlu1 %v653_v33, %s1748_s27 }
 0x298   : > { %701 = vrot.lane.b32.xlu0 %v694_v42, %s1741_s20 }
 0x29a   : > { %699 = vrot.lane.b32.xlu1 %v692_v44, %s1741_s20 }
 0x29c   : > { %728 = vrot.lane.b32.xlu0 %v721_v46, %s1752_s22 }
 0x29e   : > { %726 = vrot.lane.b32.xlu1 %v719_v48, %s1752_s22 }
 0x2a0   : > { %756 = vrot.lane.b32.xlu0 %v749_v50, %s1746_s25 }
 0x2a2   : > { %754 = vrot.lane.b32.xlu1 %v747_v51, %s1746_s25 }
 0x2a4   : > { %796 = vrot.lane.b32.xlu0 %v694_v42, %s1753_s24 }
 0x2a6   : > { %794 = vrot.lane.b32.xlu1 %v692_v44, %s1753_s24 }
 0x2a8   : > { %817 = vrot.lane.b32.xlu0 %v721_v46, %s1754_s26 }
 0x2aa   : > { %815 = vrot.lane.b32.xlu1 %v719_v48, %s1754_s26 }
 0x2ac   : > { %838 = vrot.lane.b32.xlu0 %v749_v50, %s1755_s28 }
 0x2ae   : > { %836 = vrot.lane.b32.xlu1 %v747_v51, %s1755_s28 }
 0x2b0   : > { %859 = vrot.lane.b32.xlu0 %v654_v30, %s1751_s21 }
 0x2b2   : > { %857 = vrot.lane.b32.xlu1 %v653_v33, %s1751_s21 }
 0x2b4   : > { %910 = vperm.xlu0 %1720, %v902_v52  }
 0x2b6   : > { %905 = vperm.xlu1 %1721, %v901_v53  }
 0x2e6   : > { %v773_v55 = vpop.permute.xlu0 %772 }
 0x2e7   : > { %786 = vst.msk [vmem:[#allocation3 + $0x58] sm:$0xff] %vm785_vm1, %v773_v55  ;;  %vm848_vm1 = vcmask 367622  }
 0x2e8   : > { %v771_v56 = vpop.permute.xlu1 %770 }
 0x2e9   : > { %v1978_v57 = vsel %vm474_vm2, %v771_v56, %v773_v55 }
 0x2ea   : > { %v856_v58 = vpop.permute.xlu0 %855 }
 0x2eb   : > { %870 = vst.msk [vmem:[#allocation3 + $0xa8] sm:$0xff] %vm869_vm4, %v856_v58  ;;  %vm840_vm4 = vcmask 506880  }
 0x2ec   : > { %v854_v59 = vpop.permute.xlu1 %853 }
 0x2ed   : > { %v1981_v60 = vsel %vm861_vm7, %v854_v59, %v856_v58 }
 0x2ee   : > { %v698_v61 = vpop.permute.xlu0 %697  ;;  %v888_v44 = vld [vmem:[#allocation3 + $0x58] sm:$0xff] }
 0x2ef   : > { %711 = vst.msk [vmem:[#allocation3 + $0x18] sm:$0xfc] %vm710_vm9, %v698_v61  ;;  %vm788_vm9 = vcmask 623616  }
 0x2f0   : > { %v696_v62 = vpop.permute.xlu1 %695 }
 0x2f1   : > { %v703_v63 = vsel %vm393_vm0, %v696_v62, %v698_v61 }
 0x2f2   : > { %709 = vst [vmem:[#allocation3 + $0x10] sm:$0xfc] %v703_v63  ;;  %v725_v1 = vpop.permute.xlu0 %724 }
 0x2f3   : > { %739 = vst.msk [vmem:[#allocation3 + $0x28] sm:$0xf0] %vm738_vm10, %v725_v1  ;;  %vm713_vm10 = vcmask 887808  }
 0x2f4   : > { %v723_v2 = vpop.permute.xlu1 %722 }
 0x2f5   : > { %v731_v3 = vsel %vm730_vm11, %v723_v2, %v725_v1 }
 0x2f6   : > { %737 = vst [vmem:[#allocation3 + $0x20] sm:$0xf0] %v731_v3  ;;  %v753_v4 = vpop.permute.xlu0 %752  ;;  %v880_v6 = vld [vmem:[#allocation3 + $0x18] sm:$0xff] }
 0x2f7   : > { %766 = vst.msk [vmem:[#allocation3 + $0x38] sm:$0xc0] %vm765_vm12, %v753_v4  ;;  %v1619_v7 = vpack.c.bf16 %v880_v6, %v878_v5  ;;  %vm741_vm12 = vcmask 873472  }
 0x2f8   : > { %v751_v8 = vpop.permute.xlu1 %750 }
 0x2f9   : > { %v758_v9 = vsel %vm450_vm13, %v751_v8, %v753_v4  ;;  %1620 = vmatprep.subr.bf16.mxu1 %v1619_v7  ;;  %v879_v10 = vld [vmem:[#allocation3 + $0x10] sm:$0xff]  ;;  %v898_v4 = vld [vmem:[#allocation3 + $0xa8] sm:$0xff] }
 0x2fa   : > { %764 = vst [vmem:[#allocation3 + $0x30] sm:$0xc0] %v758_v9  ;;  %v793_v11 = vpop.permute.xlu0 %792  ;;  %v1621_v12 = vpack.c.bf16 %v879_v10, %v1926_v28  ;;  %v875_v9 = vld [vmem:[%s2149_s4] sm:$0xff]  ;;  %v876_v10 = vld [vmem:[%s2149_s4 + $0x8] sm:$0xff] }
 0x2fb   : > { %807 = vst.msk [vmem:[#allocation3 + $0x68] sm:$0xfc] %vm806_vm14, %v793_v11  ;;  %vm768_vm14 = vcmask 646144  }
 0x2fc   : > { %1622 = vmatpush1.bf16.msra.mxu1 %v1621_v12  ;;  %v791_v13 = vpop.permute.xlu1 %790 }
 0x2fd   : > { %v799_v14 = vsel %vm798_vm15, %v791_v13, %v793_v11 }
 0x2fe   : > { %805 = vst [vmem:[#allocation3 + $0x60] sm:$0xfc] %v799_v14  ;;  %v814_v15 = vpop.permute.xlu0 %813 }
 0x2ff   : > { %828 = vst.msk [vmem:[#allocation3 + $0x78] sm:$0xf0] %vm827_vm5, %v814_v15  ;;  %vm809_vm5 = vcmask 609280  }
 0x300   : > { %v812_v16 = vpop.permute.xlu1 %811 }
 0x301   : > { %v820_v17 = vsel %vm819_vm8, %v812_v16, %v814_v15 }
 0x302   : > { %826 = vst [vmem:[#allocation3 + $0x70] sm:$0xf0] %v820_v17  ;;  %v835_v18 = vpop.permute.xlu0 %834 }
 0x303   : > { %849 = vst.msk [vmem:[#allocation3 + $0x88] sm:$0xc0] %vm848_vm1, %v835_v18  ;;  %vm830_vm1 = vcmask 381952  }
 0x304   : > { %v833_v19 = vpop.permute.xlu1 %832 }
 0x305   : > { %v841_v20 = vsel %vm840_vm4, %v833_v19, %v835_v18 }
 0x306   : > { %847 = vst [vmem:[#allocation3 + $0x80] sm:$0xc0] %v841_v20  ;;  %v777_v21 = vpop.permute.xlu0 %776 }
 0x307   : > { %789 = vst.msk [vmem:[#allocation3 + $0x68] sm:$0x3] %vm788_vm9, %v777_v21  ;;  %vm851_vm9 = vcmask 367616  }
 0x308   : > { %v775_v22 = vpop.permute.xlu1 %774 }
 0x309   : > { %v779_v23 = vsel %vm474_vm2, %v775_v22, %v777_v21 }
 0x30a   : > { %787 = vst [vmem:[#allocation3 + $0x60] sm:$0x3] %v779_v23  ;;  %v702_v24 = vpop.permute.xlu0 %701 }
 0x30b   : > { %714 = vst.msk [vmem:[#allocation3 + $0x28] sm:$0xf] %vm713_vm10, %v702_v24  ;;  %vm872_vm10 = vcmask 345088  }
 0x30c   : > { %v700_v25 = vpop.permute.xlu1 %699 }
 0x30d   : > { %v704_v26 = vsel %vm393_vm0, %v700_v25, %v702_v24 }
 0x30e   : > { %712 = vst [vmem:[#allocation3 + $0x20] sm:$0xf] %v704_v26  ;;  %v729_v27 = vpop.permute.xlu0 %728  ;;  %v890_v50 = vld [vmem:[#allocation3 + $0x68] sm:$0xff] }
 0x30f   : > { %742 = vst.msk [vmem:[#allocation3 + $0x38] sm:$0x3f] %vm741_vm12, %v729_v27  ;;  %vm1640_vm12 = vmpackc.low %vm688_vm3, %vm1750_vm6 }
 0x310   : > { %v727_v28 = vpop.permute.xlu1 %726 }
 0x311   : > { %v732_v29 = vsel %vm730_vm11, %v727_v28, %v729_v27  ;;  %v889_v55 = vld [vmem:[#allocation3 + $0x60] sm:$0xff] }
 0x312   : > { %740 = vst [vmem:[#allocation3 + $0x30] sm:$0x3f] %v732_v29  ;;  %v757_v30 = vpop.permute.xlu0 %756  ;;  %v882_v34 = vld [vmem:[#allocation3 + $0x28] sm:$0xff] }
 0x313   : > { %769 = vst.msk [vmem:[#allocation3 + $0x48] sm:$0xff] %vm768_vm14, %v757_v30  ;;  %vm913_vm14 = vcmask 736256  }
 0x314   : > { %v755_v31 = vpop.permute.xlu1 %754 }
 0x315   : > { %v759_v32 = vsel %vm450_vm13, %v755_v31, %v757_v30  ;;  %v881_v39 = vld [vmem:[#allocation3 + $0x20] sm:$0xff]  ;;  %v1209_v30 = vld [vmem:[%s2151_s6 + $0x8] sm:$0xff] }
 0x316   : > { %v797_v33 = vpop.permute.xlu0 %796  ;;  %v884_v35 = vld [vmem:[#allocation3 + $0x38] sm:$0xff]  ;;  %v1629_v49 = vpack.c.bf16 %v1978_v57, %v759_v32  ;;  %v1252_v31 = vld [vmem:[%s2152_s7] sm:$0xff]  ;;  %v1253_v32 = vld [vmem:[%s2152_s7 + $0x8] sm:$0xff] }
 0x317   : > { %810 = vst.msk [vmem:[#allocation3 + $0x78] sm:$0xf] %vm809_vm5, %v797_v33  ;;  %v1623_v36 = vpack.c.bf16 %v884_v35, %v882_v34  ;;  %v1255_v34 = vld [vmem:[%s2152_s7 + $0x18] sm:$0xff]  ;;  %v1407_v35 = vld [vmem:[%s2154_s9] sm:$0x1f] }
 0x318   : > { %v795_v37 = vpop.permute.xlu1 %794 }
 0x319   : > { %v800_v38 = vsel %vm798_vm15, %v795_v37, %v797_v33  ;;  %1624 = vmatprep.subr.bf16.mxu1 %v1623_v36  ;;  %v883_v40 = vld [vmem:[#allocation3 + $0x30] sm:$0xff]  ;;  %v1207_v36 = vld [vmem:[%s2145_s0 + $0x2] sm:$0x1] }
 0x31a   : > { %808 = vst [vmem:[#allocation3 + $0x70] sm:$0xf] %v800_v38  ;;  %v818_v41 = vpop.permute.xlu0 %817  ;;  %v1625_v42 = vpack.c.bf16 %v883_v40, %v881_v39  ;;  %v886_v43 = vld [vmem:[#allocation3 + $0x48] sm:$0xff]  ;;  %v1254_v33 = vld [vmem:[%s2152_s7 + $0x10] sm:$0xff]  ;;  %1693 = vpush %v1207_v36 }
 0x31b   : > { %831 = vst.msk [vmem:[#allocation3 + $0x88] sm:$0x3f] %vm830_vm1, %v818_v41  ;;  %v1627_v45 = vpack.c.bf16 %v888_v44, %v886_v43 }
 0x31c   : > { %1626 = vmatpush1.bf16.msra.mxu1 %v1625_v42  ;;  %v816_v46 = vpop.permute.xlu1 %815 }
 0x31d   : > { %v821_v47 = vsel %vm819_vm8, %v816_v46, %v818_v41  ;;  %1628 = vmatprep.subr.bf16.mxu1 %v1627_v45 }
 0x31e   : > { %829 = vst [vmem:[#allocation3 + $0x80] sm:$0x3f] %v821_v47  ;;  %v839_v48 = vpop.permute.xlu0 %838  ;;  %v892_v51 = vld [vmem:[#allocation3 + $0x78] sm:$0xff] }
 0x31f   : > { %852 = vst.msk [vmem:[#allocation3 + $0x98] sm:$0xff] %vm851_vm9, %v839_v48  ;;  %v1631_v52 = vpack.c.bf16 %v892_v51, %v890_v50  ;;  %vm1276_vm9 = vcmask 130048  }
 0x320   : > { %1630 = vmatpush1.bf16.msra.mxu1 %v1629_v49  ;;  %v837_v53 = vpop.permute.xlu1 %836  ;;  %1598 = vmatprep.mubr.msk.f32.mxu0 %vm1276_vm9, %v1209_v30 }
 0x321   : > { %v842_v54 = vsel %vm840_vm4, %v837_v53, %v839_v48  ;;  %1632 = vmatprep.subr.bf16.mxu1 %v1631_v52  ;;  %v891_v56 = vld [vmem:[#allocation3 + $0x70] sm:$0xff] }
 0x322   : > { %v860_v58 = vpop.permute.xlu0 %859  ;;  %v1633_v59 = vpack.c.bf16 %v891_v56, %v889_v55  ;;  %v894_v63 = vld [vmem:[#allocation3 + $0x88] sm:$0xff] }
 0x323   : > { %873 = vst.msk [vmem:[#allocation3 + $0xb8] sm:$0x3] %vm872_vm10, %v860_v58  ;;  %vm1413_vm10 = vcmask 261120  }
 0x324   : > { %1634 = vmatpush1.bf16.msra.mxu1 %v1633_v59  ;;  %v858_v61 = vpop.permute.xlu1 %857 }
 0x325   : > { %v863_v62 = vsel %vm861_vm7, %v858_v61, %v860_v58  ;;  %v893_v57 = vld [vmem:[#allocation3 + $0x80] sm:$0xff] }
 0x326   : > { %871 = vst [vmem:[#allocation3 + $0xb0] sm:$0x3] %v863_v62  ;;  %v896_v1 = vld [vmem:[#allocation3 + $0x98] sm:$0xff]  ;;  %v1637_v3 = vpack.c.bf16 %v842_v54, %v893_v57 }
 0x327   : > { %v1635_v2 = vpack.c.bf16 %v896_v1, %v894_v63 }
 0x329   : > { %1636 = vmatprep.subr.bf16.mxu1 %v1635_v2 }
 0x32a   : > { %1638 = vmatpush1.bf16.msra.mxu1 %v1637_v3  ;;  %v900_v5 = vld [vmem:[#allocation3 + $0xb8] sm:$0x3] }
 0x32b   : > { %v1639_v6 = vpack.c.bf16 %v900_v5, %v898_v4 }
 0x32d   : > { %1641 = vmatprep.subr.msk.bf16.mxu1 %vm1640_vm12, %v1639_v6  ;;  %v899_v7 = vld [vmem:[#allocation3 + $0xb0] sm:$0x3] }
 0x32e   : > { %v1642_v8 = vpack.c.bf16 %v899_v7, %v1981_v60  ;;  %v1009_v60 = vstv %s1692_s29 }
 0x330   : > { %1644 = vmatpush1.bf16.msk.msra.mxu1 %vm1640_vm12, %v1642_v8 }
 0x333   : > { %1596 = vmatmul.mubr.msk.f32.vlgmr.msra.gmra.mrb[4].mxu1 %vm913_vm14, %v875_v9  ;;  %v911_v17 = vpop.permute.xlu0 %910 }
 0x334   : > { %996 = vmatprep.mubr.f32.mxu1 %v1740_v0 }
 0x335   : > { %v906_v11 = vpop.permute.xlu1 %905 }
 0x337   : > { %1597 = vmatmul.mubr.msk.f32.gmra.mrb[6].mxu1 %vm913_vm14, %v876_v10 }
 0x338   : > { %1481 = vmatprep.mubr.f32.mxu1 %v1740_v0 }
 0x406   : > { %v992_v12 = vpop.f32.mrb[4].mxu1 }
 0x407   : > { %v993_v13 = vadd.f32 %v992_v12, %v906_v11  ;;  %v994_v14 = vpop.f32.mrb[5].mxu1 }
 0x408   : > { %v995_v15 = vadd.f32 %v994_v14, %v906_v11 }
 0x409   : > { %vm1003_vm6 = vcmp.ge.f32.partialorder %v993_v13, 0.0  ;;  %v1011_v16 = vmul.f32 %v1009_v60, %v993_v13 }
 0x40a   : > { %vm1004_vm3 = vcmp.ge.f32.partialorder %v995_v15, 0.0  ;;  %v1012_v18 = vmul.f32 %v1009_v60, %v995_v15  ;;  %v998_v19 = vpop.f32.mrb[6].mxu1 }
 0x40b   : > { %v1015_v20 = vsel %vm1003_vm6, %v993_v13, %v1011_v16  ;;  %v999_v21 = vadd.f32 %v998_v19, %v911_v17  ;;  %v1000_v22 = vpop.f32.mrb[7].mxu1 }
 0x40c   : > { %v1016_v23 = vsel %vm1004_vm3, %v995_v15, %v1012_v18  ;;  %v1001_v24 = vadd.f32 %v1000_v22, %v911_v17  ;;  %1063 = vrot.lane.b32.xlu1 %v1015_v20, %s1741_s20 }
 0x40d   : > { %vm1005_vm5 = vcmp.ge.f32.partialorder %v999_v21, 0.0  ;;  %v1013_v0 = vmul.f32 %v1009_v60, %v999_v21  ;;  %1065 = vrot.lane.b32.xlu0 %v1016_v23, %s1741_s20 }
 0x40e   : > { %vm1006_vm1 = vcmp.ge.f32.partialorder %v1001_v24, 0.0  ;;  %v1014_v25 = vmul.f32 %v1009_v60, %v1001_v24 }
 0x40f   : > { %v1017_v26 = vsel %vm1005_vm5, %v999_v21, %v1013_v0 }
 0x410   : > { %v1018_v27 = vsel %vm1006_vm1, %v1001_v24, %v1014_v25  ;;  %1081 = vrot.lane.b32.xlu1 %v1015_v20, %s1752_s22  ;;  %v1647_v28 = vpack.c.bf16 %v1017_v26, %v1015_v20 }
 0x411   : > { %1083 = vrot.lane.b32.xlu0 %v1016_v23, %s1752_s22  ;;  %v1645_v29 = vpack.c.bf16 %v1018_v27, %v1016_v23 }
 0x413   : > { %1646 = vmatprep.subr.bf16.mxu0 %v1645_v29 }
 0x414   : > { %1099 = vrot.lane.b32.xlu1 %v1015_v20, %s1746_s25  ;;  %1648 = vmatpush1.bf16.msra.mxu0 %v1647_v28 }
 0x415   : > { %1101 = vrot.lane.b32.xlu0 %v1016_v23, %s1746_s25 }
 0x418   : > { %1117 = vrot.lane.b32.xlu1 %v1015_v20, %s1748_s27 }
 0x419   : > { %1119 = vrot.lane.b32.xlu0 %v1016_v23, %s1748_s27 }
 0x41c   : > { %1135 = vrot.lane.b32.xlu1 %v1015_v20, %s1753_s24 }
 0x41d   : > { %1137 = vrot.lane.b32.xlu0 %v1016_v23, %s1753_s24 }
 0x420   : > { %1153 = vrot.lane.b32.xlu1 %v1015_v20, %s1754_s26 }
 0x421   : > { %1155 = vrot.lane.b32.xlu0 %v1016_v23, %s1754_s26 }
 0x424   : > { %1171 = vrot.lane.b32.xlu1 %v1015_v20, %s1755_s28 }
 0x425   : > { %1173 = vrot.lane.b32.xlu0 %v1016_v23, %s1755_s28 }
 0x428   : > { %1189 = vrot.lane.b32.xlu1 %v1015_v20, %s1751_s21 }
 0x429   : > { %1191 = vrot.lane.b32.xlu0 %v1016_v23, %s1751_s21 }
 0x42c   : > { %1067 = vrot.lane.b32.xlu1 %v1017_v26, %s1741_s20 }
 0x42d   : > { %1069 = vrot.lane.b32.xlu0 %v1018_v27, %s1741_s20 }
 0x430   : > { %1085 = vrot.lane.b32.xlu1 %v1017_v26, %s1752_s22 }
 0x431   : > { %1087 = vrot.lane.b32.xlu0 %v1018_v27, %s1752_s22 }
 0x434   : > { %1103 = vrot.lane.b32.xlu1 %v1017_v26, %s1746_s25 }
 0x435   : > { %1105 = vrot.lane.b32.xlu0 %v1018_v27, %s1746_s25 }
 0x438   : > { %1121 = vrot.lane.b32.xlu1 %v1017_v26, %s1748_s27 }
 0x439   : > { %1123 = vrot.lane.b32.xlu0 %v1018_v27, %s1748_s27 }
 0x43c   : > { %1139 = vrot.lane.b32.xlu1 %v1017_v26, %s1753_s24 }
 0x43d   : > { %1141 = vrot.lane.b32.xlu0 %v1018_v27, %s1753_s24 }
 0x440   : > { %1157 = vrot.lane.b32.xlu1 %v1017_v26, %s1754_s26 }
 0x441   : > { %1159 = vrot.lane.b32.xlu0 %v1018_v27, %s1754_s26 }
 0x444   : > { %1175 = vrot.lane.b32.xlu1 %v1017_v26, %s1755_s28 }
 0x445   : > { %1177 = vrot.lane.b32.xlu0 %v1018_v27, %s1755_s28 }
 0x448   : > { %1193 = vrot.lane.b32.xlu1 %v1017_v26, %s1751_s21 }
 0x449   : > { %1195 = vrot.lane.b32.xlu0 %v1018_v27, %s1751_s21  ;;  %s1694_s21 = spop %1693 }
 0x44c   : > { %1258 = vperm.xlu1 %1721, %v1252_v31  }
 0x44d   : > { %1263 = vperm.xlu0 %1720, %v1253_v32  }
 0x450   : > { %1268 = vperm.xlu1 %1721, %v1254_v33  }
 0x451   : > { %1273 = vperm.xlu0 %1720, %v1255_v34  }
 0x454   : > { %1410 = vperm.xlu1 %1721, %v1407_v35  }
 0x47e   : > { %v1064_v37 = vpop.permute.xlu1 %1063 }
 0x47f   : > { %v1066_v38 = vpop.permute.xlu0 %1065 }
 0x480   : > { %v1071_v39 = vsel %vm393_vm0, %v1064_v37, %v1066_v38  ;;  %1078 = vst.msk [vmem:[#allocation4 + $0x28] sm:$0xff] %vm393_vm0, %v1066_v38 }
 0x482   : > { %v1082_v40 = vpop.permute.xlu1 %1081 }
 0x483   : > { %v1084_v41 = vpop.permute.xlu0 %1083 }
 0x484   : > { %v1089_v42 = vsel %vm730_vm11, %v1082_v40, %v1084_v41  ;;  %1096 = vst.msk [vmem:[#allocation4 + $0x48] sm:$0xff] %vm730_vm11, %v1084_v41 }
 0x486   : > { %v1100_v43 = vpop.permute.xlu1 %1099 }
 0x487   : > { %v1102_v44 = vpop.permute.xlu0 %1101  ;;  %v1221_v7 = vld [vmem:[#allocation4 + $0x28] sm:$0xff] }
 0x488   : > { %v1107_v45 = vsel %vm450_vm13, %v1100_v43, %v1102_v44  ;;  %1114 = vst.msk [vmem:[#allocation4 + $0x68] sm:$0xff] %vm450_vm13, %v1102_v44 }
 0x48a   : > { %v1118_v46 = vpop.permute.xlu1 %1117 }
 0x48b   : > { %v1120_v47 = vpop.permute.xlu0 %1119  ;;  %v1225_v13 = vld [vmem:[#allocation4 + $0x48] sm:$0xff] }
 0x48c   : > { %v2071_v48 = vsel %vm474_vm2, %v1118_v46, %v1120_v47  ;;  %1132 = vst.msk [vmem:[#allocation4 + $0x88] sm:$0xff] %vm474_vm2, %v1120_v47 }
 0x48e   : > { %v1136_v49 = vpop.permute.xlu1 %1135 }
 0x48f   : > { %v1138_v50 = vpop.permute.xlu0 %1137  ;;  %v1229_v20 = vld [vmem:[#allocation4 + $0x68] sm:$0xff] }
 0x490   : > { %v2075_v51 = vsel %vm798_vm15, %v1136_v49, %v1138_v50  ;;  %1150 = vst.msk [vmem:[#allocation4 + $0xa8] sm:$0xff] %vm798_vm15, %v1138_v50 }
 0x492   : > { %v1154_v52 = vpop.permute.xlu1 %1153 }
 0x493   : > { %v1156_v53 = vpop.permute.xlu0 %1155  ;;  %v1233_v26 = vld [vmem:[#allocation4 + $0x88] sm:$0xff] }
 0x494   : > { %v2079_v54 = vsel %vm819_vm8, %v1154_v52, %v1156_v53  ;;  %1168 = vst.msk [vmem:[#allocation4 + $0xc8] sm:$0xff] %vm819_vm8, %v1156_v53  ;;  %v1208_v53 = vld [vmem:[%s2151_s6] sm:$0xff] }
 0x496   : > { %v1172_v55 = vpop.permute.xlu1 %1171 }
 0x497   : > { %v1174_v56 = vpop.permute.xlu0 %1173  ;;  %v1237_v33 = vld [vmem:[#allocation4 + $0xa8] sm:$0xff] }
 0x498   : > { %v2083_v58 = vsel %vm840_vm4, %v1172_v55, %v1174_v56  ;;  %1186 = vst.msk [vmem:[#allocation4 + $0xe8] sm:$0xff] %vm840_vm4, %v1174_v56  ;;  %v1210_v55 = vld [vmem:[%s2151_s6 + $0x10] sm:$0xff]  ;;  %v1213_v56 = vld [vmem:[%s2151_s6 + $0x28] sm:$0xff] }
 0x49a   : > { %v1190_v59 = vpop.permute.xlu1 %1189 }
 0x49b   : > { %v1192_v61 = vpop.permute.xlu0 %1191  ;;  %v1241_v40 = vld [vmem:[#allocation4 + $0xc8] sm:$0xff] }
 0x49c   : > { %v2087_v62 = vsel %vm861_vm7, %v1190_v59, %v1192_v61  ;;  %1204 = vst.msk [vmem:[#allocation4 + $0x108] sm:$0xff] %vm861_vm7, %v1192_v61  ;;  %v1215_v59 = vld [vmem:[%s2151_s6 + $0x38] sm:$0xff]  ;;  %v1214_v61 = vld [vmem:[%s2151_s6 + $0x30] sm:$0xff] }
 0x49e   : > { %v1068_v57 = vpop.permute.xlu1 %1067 }
 0x49f   : > { %v1070_v63 = vpop.permute.xlu0 %1069 }
 0x4a0   : > { %v1072_v1 = vsel %vm393_vm0, %v1068_v57, %v1070_v63  ;;  %1080 = vst.msk [vmem:[#allocation4 + $0x38] sm:$0xff] %vm393_vm0, %v1070_v63 }
 0x4a1   : > { %v1651_v11 = vpack.c.bf16 %v1072_v1, %v1071_v39 }
 0x4a2   : > { %v1086_v2 = vpop.permute.xlu1 %1085 }
 0x4a3   : > { %v1088_v3 = vpop.permute.xlu0 %1087  ;;  %v1249_v49 = vld [vmem:[#allocation4 + $0x108] sm:$0xff] }
 0x4a4   : > { %v1090_v4 = vsel %vm730_vm11, %v1086_v2, %v1088_v3  ;;  %1098 = vst.msk [vmem:[#allocation4 + $0x58] sm:$0xff] %vm730_vm11, %v1088_v3  ;;  %v1388_v3 = vstv %s1694_s21 }
 0x4a5   : > { %v1655_v17 = vpack.c.bf16 %v1090_v4, %v1089_v42 }
 0x4a6   : > { %v1104_v5 = vpop.permute.xlu1 %1103 }
 0x4a7   : > { %v1106_v6 = vpop.permute.xlu0 %1105  ;;  %v1223_v8 = vld [vmem:[#allocation4 + $0x38] sm:$0xff] }
 0x4a8   : > { %v1108_v9 = vsel %vm450_vm13, %v1104_v5, %v1106_v6  ;;  %1116 = vst.msk [vmem:[#allocation4 + $0x78] sm:$0xff] %vm450_vm13, %v1106_v6  ;;  %v1649_v10 = vpack.c.bf16 %v1223_v8, %v1221_v7 }
 0x4a9   : > { %v1659_v24 = vpack.c.bf16 %v1108_v9, %v1107_v45  ;;  %v1245_v45 = vld [vmem:[#allocation4 + $0xe8] sm:$0xff] }
 0x4aa   : > { %v1122_v12 = vpop.permute.xlu1 %1121  ;;  %1650 = vmatprep.subr.bf16.mxu0 %v1649_v10 }
 0x4ab   : > { %v1124_v60 = vpop.permute.xlu0 %1123  ;;  %1652 = vmatpush1.bf16.msra.mxu0 %v1651_v11  ;;  %v1227_v14 = vld [vmem:[#allocation4 + $0x58] sm:$0xff] }
 0x4ac   : > { %v1126_v15 = vsel %vm474_vm2, %v1122_v12, %v1124_v60  ;;  %1134 = vst.msk [vmem:[#allocation4 + $0x98] sm:$0xff] %vm474_vm2, %v1124_v60  ;;  %v1653_v16 = vpack.c.bf16 %v1227_v14, %v1225_v13 }
 0x4ad   : > { %v1663_v30 = vpack.c.bf16 %v1126_v15, %v2071_v48 }
 0x4ae   : > { %v1140_v18 = vpop.permute.xlu1 %1139  ;;  %1654 = vmatprep.subr.bf16.mxu0 %v1653_v16 }
 0x4af   : > { %v1142_v19 = vpop.permute.xlu0 %1141  ;;  %1656 = vmatpush1.bf16.msra.mxu0 %v1655_v17  ;;  %v1231_v21 = vld [vmem:[#allocation4 + $0x78] sm:$0xff] }
 0x4b0   : > { %v1144_v22 = vsel %vm798_vm15, %v1140_v18, %v1142_v19  ;;  %1152 = vst.msk [vmem:[#allocation4 + $0xb8] sm:$0xff] %vm798_vm15, %v1142_v19  ;;  %v1657_v23 = vpack.c.bf16 %v1231_v21, %v1229_v20 }
 0x4b1   : > { %v1667_v37 = vpack.c.bf16 %v1144_v22, %v2075_v51 }
 0x4b2   : > { %v1158_v0 = vpop.permute.xlu1 %1157  ;;  %1658 = vmatprep.subr.bf16.mxu0 %v1657_v23 }
 0x4b3   : > { %v1160_v25 = vpop.permute.xlu0 %1159  ;;  %1660 = vmatpush1.bf16.msra.mxu0 %v1659_v24  ;;  %v1235_v27 = vld [vmem:[#allocation4 + $0x98] sm:$0xff] }
 0x4b4   : > { %v1162_v28 = vsel %vm819_vm8, %v1158_v0, %v1160_v25  ;;  %1170 = vst.msk [vmem:[#allocation4 + $0xd8] sm:$0xff] %vm819_vm8, %v1160_v25  ;;  %v1661_v29 = vpack.c.bf16 %v1235_v27, %v1233_v26 }
 0x4b5   : > { %v1671_v44 = vpack.c.bf16 %v1162_v28, %v2079_v54  ;;  %v1211_v54 = vld [vmem:[%s2151_s6 + $0x18] sm:$0xff] }
 0x4b6   : > { %v1176_v31 = vpop.permute.xlu1 %1175  ;;  %1662 = vmatprep.subr.bf16.mxu0 %v1661_v29 }
 0x4b7   : > { %v1178_v32 = vpop.permute.xlu0 %1177  ;;  %1664 = vmatpush1.bf16.msra.mxu0 %v1663_v30  ;;  %v1239_v34 = vld [vmem:[#allocation4 + $0xb8] sm:$0xff] }
 0x4b8   : > { %v1180_v35 = vsel %vm840_vm4, %v1176_v31, %v1178_v32  ;;  %1188 = vst.msk [vmem:[#allocation4 + $0xf8] sm:$0xff] %vm840_vm4, %v1178_v32  ;;  %v1665_v36 = vpack.c.bf16 %v1239_v34, %v1237_v33 }
 0x4b9   : > { %v1675_v48 = vpack.c.bf16 %v1180_v35, %v2083_v58  ;;  %v1212_v58 = vld [vmem:[%s2151_s6 + $0x20] sm:$0xff] }
 0x4ba   : > { %v1194_v38 = vpop.permute.xlu1 %1193  ;;  %1666 = vmatprep.subr.bf16.mxu0 %v1665_v36 }
 0x4bb   : > { %v1196_v39 = vpop.permute.xlu0 %1195  ;;  %1668 = vmatpush1.bf16.msra.mxu0 %v1667_v37  ;;  %v1243_v41 = vld [vmem:[#allocation4 + $0xd8] sm:$0xff]  ;;  %v1406_v37 = vld [vmem:[%s2153_s8] sm:$0x1f] }
 0x4bc   : > { %v1198_v42 = vsel %vm861_vm7, %v1194_v38, %v1196_v39  ;;  %1206 = vst.msk [vmem:[#allocation4 + $0x118] sm:$0xff] %vm861_vm7, %v1196_v39  ;;  %v1669_v43 = vpack.c.bf16 %v1243_v41, %v1241_v40 }
 0x4bd   : > { %v1679_v52 = vpack.c.bf16 %v1198_v42, %v2087_v62 }
 0x4be   : > { %1670 = vmatprep.subr.bf16.mxu0 %v1669_v43 }
 0x4bf   : > { %1672 = vmatpush1.bf16.msra.mxu0 %v1671_v44  ;;  %v1247_v46 = vld [vmem:[#allocation4 + $0xf8] sm:$0xff] }
 0x4c0   : > { %v1673_v47 = vpack.c.bf16 %v1247_v46, %v1245_v45 }
 0x4c2   : > { %1674 = vmatprep.subr.bf16.mxu0 %v1673_v47 }
 0x4c3   : > { %1676 = vmatpush1.bf16.msra.mxu0 %v1675_v48  ;;  %v1251_v50 = vld [vmem:[#allocation4 + $0x118] sm:$0xff] }
 0x4c4   : > { %v1677_v51 = vpack.c.bf16 %v1251_v50, %v1249_v49  ;;  %v1756_v49 = vmov 1966171168  }
 0x4c5   : > { %v1506_v50 = vunpack.c.l.s4 %v1756_v49 }
 0x4c6   : > { %1678 = vmatprep.subr.bf16.mxu0 %v1677_v51  ;;  %v1508_v51 = vlaneseq }
 0x4c7   : > { %1680 = vmatpush1.bf16.msra.mxu0 %v1679_v52  ;;  %v1507_v52 = vunpack.c.0.s8 %v1506_v50 }
 0x4c8   : > { %vm1522_vm12 = vcmp.lt.s32.totalorder %v1508_v51, 256 }
 0x4ca   : > { %1354 = vmatmul.mubr.f32.vlgmr.msra.gmra.mrb[0].mxu0 %v1208_v53  ;;  %v1509_v53 = vshrl.u32 %v1508_v51, 7 }
 0x4cb   : > { %1599 = vmatprep.mubr.msk.f32.mxu0 %vm1276_vm9, %v1211_v54  ;;  %v1259_v62 = vpop.permute.xlu1 %1258 }
 0x4cc   : > { %v1264_v4 = vpop.permute.xlu0 %1263 }
 0x4ce   : > { %1360 = vmatmul.mubr.f32.gmra.mrb[2].mxu0 %v1210_v55  ;;  %v1510_v55 = vsub.s32 %v1507_v52, %v1509_v53 }
 0x4cf   : > { %1600 = vmatprep.mubr.msk.f32.mxu0 %vm1276_vm9, %v1213_v56  ;;  %v1269_v12 = vpop.permute.xlu1 %1268 }
 0x4d0   : > { %v1274_v23 = vpop.permute.xlu0 %1273 }
 0x4d2   : > { %1366 = vmatmul.mubr.f32.gmra.mrb[4].mxu0 %v1212_v58 }
 0x4d3   : > { %1601 = vmatprep.mubr.msk.f32.mxu0 %vm1276_vm9, %v1215_v59  ;;  %v1411_v38 = vpop.permute.xlu1 %1410 }
 0x4d6   : > { %1372 = vmatmul.mubr.f32.gmra.mrb[6].mxu0 %v1214_v61 }
 0x59d   : > { %v1355_v57 = vpop.f32.mrb[0].mxu0 }
 0x59e   : > { %v1356_v63 = vadd.f32 %v1355_v57, %v1259_v62  ;;  %v1357_v1 = vpop.f32.mrb[1].mxu0 }
 0x59f   : > { %v1358_v2 = vadd.f32 %v1357_v1, %v1259_v62 }
 0x5a0   : > { %v1390_v7 = vmul.f32 %v1388_v3, %v1356_v63  ;;  %vm1378_vm0 = vcmp.ge.f32.partialorder %v1356_v63, 0.0 }
 0x5a1   : > { %v1361_v5 = vpop.f32.mrb[2].mxu0  ;;  %v1391_v10 = vmul.f32 %v1388_v3, %v1358_v2  ;;  %vm1379_vm13 = vcmp.ge.f32.partialorder %v1358_v2, 0.0 }
 0x5a2   : > { %v1362_v6 = vadd.f32 %v1361_v5, %v1264_v4  ;;  %v1363_v8 = vpop.f32.mrb[3].mxu0  ;;  %v1398_v14 = vsel %vm1378_vm0, %v1356_v63, %v1390_v7 }
 0x5a3   : > { %v1364_v9 = vadd.f32 %v1363_v8, %v1264_v4  ;;  %v1399_v20 = vsel %vm1379_vm13, %v1358_v2, %v1391_v10 }
 0x5a4   : > { %vm1380_vm2 = vcmp.ge.f32.partialorder %v1362_v6, 0.0  ;;  %v1392_v11 = vmul.f32 %v1388_v3, %v1362_v6 }
 0x5a5   : > { %vm1381_vm7 = vcmp.ge.f32.partialorder %v1364_v9, 0.0  ;;  %v1393_v60 = vmul.f32 %v1388_v3, %v1364_v9  ;;  %v1367_v13 = vpop.f32.mrb[4].mxu0 }
 0x5a6   : > { %v1400_v15 = vsel %vm1380_vm2, %v1362_v6, %v1392_v11  ;;  %v1368_v16 = vadd.f32 %v1367_v13, %v1269_v12  ;;  %v1369_v17 = vpop.f32.mrb[5].mxu0 }
 0x5a7   : > { %v1683_v18 = vpack.c.bf16 %v1400_v15, %v1398_v14  ;;  %v1370_v19 = vadd.f32 %v1369_v17, %v1269_v12  ;;  %v1401_v21 = vsel %vm1381_vm7, %v1364_v9, %v1393_v60 }
 0x5a8   : > { %v1681_v22 = vpack.c.bf16 %v1401_v21, %v1399_v20  ;;  %v1394_v0 = vmul.f32 %v1388_v3, %v1368_v16  ;;  %vm1382_vm11 = vcmp.ge.f32.partialorder %v1368_v16, 0.0 }
 0x5a9   : > { %v1373_v24 = vpop.f32.mrb[6].mxu0  ;;  %v1395_v27 = vmul.f32 %v1388_v3, %v1370_v19  ;;  %vm1383_vm15 = vcmp.ge.f32.partialorder %v1370_v19, 0.0 }
 0x5aa   : > { %v1374_v25 = vadd.f32 %v1373_v24, %v1274_v23  ;;  %v1375_v26 = vpop.f32.mrb[7].mxu0  ;;  %1682 = vmatprep.subr.bf16.mxu1 %v1681_v22  ;;  %v1402_v31 = vsel %vm1382_vm11, %v1368_v16, %v1394_v0 }
 0x5ab   : > { %v1376_v28 = vadd.f32 %v1375_v26, %v1274_v23  ;;  %1684 = vmatpush1.bf16.msra.mxu1 %v1683_v18  ;;  %v1403_v34 = vsel %vm1383_vm15, %v1370_v19, %v1395_v27 }
 0x5ac   : > { %vm1384_vm8 = vcmp.ge.f32.partialorder %v1374_v25, 0.0  ;;  %v1396_v29 = vmul.f32 %v1388_v3, %v1374_v25 }
 0x5ad   : > { %vm1385_vm4 = vcmp.ge.f32.partialorder %v1376_v28, 0.0  ;;  %v1397_v30 = vmul.f32 %v1388_v3, %v1376_v28 }
 0x5ae   : > { %v1404_v32 = vsel %vm1384_vm8, %v1374_v25, %v1396_v29 }
 0x5af   : > { %v1687_v33 = vpack.c.bf16 %v1404_v32, %v1402_v31  ;;  %v1405_v35 = vsel %vm1385_vm4, %v1376_v28, %v1397_v30 }
 0x5b0   : > { %v1685_v36 = vpack.c.bf16 %v1405_v35, %v1403_v34 }
 0x5b2   : > { %1686 = vmatprep.subr.bf16.mxu1 %v1685_v36 }
 0x5b3   : > { %1688 = vmatpush1.bf16.msra.mxu1 %v1687_v33 }
 0x5b6   : > { %1602 = vmatmul.mubr.msk.f32.vlgmr.msra.gmra.mrb[8].mxu1 %vm1413_vm10, %v1406_v37 }
 0x689   : > { %v1483_v39 = vpop.f32.mrb[8].mxu1 }
 0x68a   : > { %v1484_v40 = vadd.f32 %v1483_v39, %v1411_v38  ;;  %v1485_v41 = vpop.f32.mrb[9].mxu1 }
 0x68b   : > { %v1486_v42 = vadd.f32 %v1485_v41, %v1411_v38 }
 0x68c   : > { %1488 = vst [vmem:[%s359_s23] sm:$0x1f] %v1484_v40  ;;  %v1603_v43 = vmul.f32 -1.442695, %v1484_v40 }
 0x68d   : > { %1489 = vst [vmem:[%s359_s23 + $0x8] sm:$0x1f] %v1486_v42  ;;  %v1604_v44 = vmul.f32 -1.442695, %v1486_v42 }
 0x68e   : > { %1724 = vpow2.f32 %v1603_v43 }
 0x68f   : > { %1726 = vpow2.f32 %v1604_v44 }
 0x698   : > { %v1725_v45 = vpop.eup %1724 }
 0x699   : > { %v1727_v46 = vpop.eup %1726  ;;  %v1496_v47 = vadd.f32 1.0, %v1725_v45 }
 0x69a   : > { %v1497_v48 = vadd.f32 1.0, %v1727_v46 }
 0x69b   : > { %1728 = vrcp.f32 %v1496_v47 }
 0x69c   : > { %1730 = vrcp.f32 %v1497_v48 }
 0x6a5   : > { %v1729_v54 = vpop.eup %1728 }
 0x6a6   : > { %v1731_v56 = vpop.eup %1730 }
 0x6a7   : > { %v1504_v58 = vcombine.low %v1729_v54, %v1731_v56 }
 0x6a9   : > { %v1511_v59 = vrot.slane %v1504_v58, %v1510_v55 }
 0x6ab   : > { %v1518_v61 = vrot.slane %v1511_v59, %v1510_v55 }
 0x6ad   : > { %1524 = vst.msk [vmem:[%s359_s23] ss:$8 sm:$0x3] %vm1522_vm12, %v1518_v61 }
 0x6ae PF: > { %s20_s13 = sadd.s32 1, %s1738_s13  }
 0x6af   : > { %p17_p4 = scmp.ge.s32.totalorder %s20_s13, 4  }
 0x6b1   :  { %19 = sbr.rel (!%p17_p4) target bundleno = 1 (0x1), region = 90 }

</bundles_post_ra>
